<compile_context>
chip_gen: v6e
topology: v6e:2x2x1
jax: 0.10.0
libtpu: 0.0.40
codegen_flags: <defaults>
</compile_context>

<pallas_src>
import math
import functools
import numpy as np

import jax
import jax.numpy as jnp
from jax.experimental import pallas as pl
from jax.experimental.pallas import tpu as pltpu


# ----------------------------------------------------------------------------------
# host-side setup math (mirrors the PyTorch module __init__; produces constants only)
# ----------------------------------------------------------------------------------
def lrelu_cmap(c, neg_slope):
    return c + (1 - neg_slope) ** 2 / (math.pi * (1 + neg_slope ** 2)) * (
        math.sqrt(1 - c ** 2) - c * math.acos(c))


def compose(f, n):
    def fn(x):
        for _ in range(n):
            x = f(x)
        return x
    return fn


def binary_search(f, target, input_, min_, max_, tol=1e-8, max_eval=100):
    for _ in range(max_eval):
        value = f(input_)
        if math.isinf(value) or math.isnan(value):
            raise ValueError(f"Function returned {value}.")
        if abs(value - target) < tol:
            return input_
        if value > target:
            max_ = input_
        elif value < target:
            min_ = input_
        input_ = 0.5 * (min_ + max_)
    raise ValueError("Maximum evaluations exceeded while searching for solution.")


def gamma_to_alpha(gamma):
    return math.sqrt(1 - math.exp(-2 * gamma))


def get_gamma_depth(depth, alpha_max_depth, max_depth):
    exponent = 2 * depth / max_depth
    return -0.5 * math.log(1 - alpha_max_depth ** exponent)


def get_kernel_matrix(dim, gamma_depth):
    ar = np.arange(dim, dtype=np.float64)
    return np.exp(-gamma_depth * np.abs(ar[:, None] - ar[None, :]))


def sqrtpd(A, inverse=False):
    # symmetric PSD (inverse) square root via eigendecomposition (host-side NumPy).
    eigvals, eigvecs = np.linalg.eigh(A)
    threshold = eigvals.max() * eigvals.shape[-1] * np.finfo(eigvals.dtype).eps
    clamped = np.clip(eigvals, threshold, None)
    s = 1.0 / np.sqrt(clamped) if inverse else np.sqrt(clamped)
    return (eigvecs * s[None, :]) @ eigvecs.T


def get_decomposed_kernel_matrix(dim, depth, alpha_max_depth, max_depth, inverse):
    if depth == 0:
        return np.eye(dim, dtype=np.float32)
    gamma_depth = get_gamma_depth(depth, alpha_max_depth, max_depth)
    K = get_kernel_matrix(dim, gamma_depth)
    return sqrtpd(K, inverse).astype(np.float32)


def make_attention_buffers(seq_len, depth, max_depth, alpha_max_depth):
    prev_inv = get_decomposed_kernel_matrix(seq_len, depth - 1, alpha_max_depth, max_depth, True)
    curr = get_decomposed_kernel_matrix(seq_len, depth, alpha_max_depth, max_depth, False)
    attention = curr.astype(np.float32) @ prev_inv.astype(np.float32)
    mn = float(attention.min())
    if mn <= 0:
        attention = np.clip(attention, abs(mn) + np.finfo(np.float32).eps, None)
    row_sum = attention.sum(axis=1)                    # (N,)  -> "d" buffer
    Bmat = np.log(attention / row_sum)                 # A[i, j] / row_sum[j]  (PyTorch broadcast)
    return row_sum.astype(np.float32), Bmat.astype(np.float32)


def posemb_sincos_2d(dim, h, w, temperature=10000.0):
    assert dim % 4 == 0, "Feature dimension must be multiple of 4 for sincos emb."
    yy, xx = np.meshgrid(np.arange(h, dtype=np.float32),
                         np.arange(w, dtype=np.float32), indexing="ij")
    omega = np.arange(dim // 4, dtype=np.float32) / (dim // 4 - 1)
    omega = 1.0 / temperature ** omega
    y = yy.flatten()[:, None] * omega[None, :]
    x = xx.flatten()[:, None] * omega[None, :]
    pe = np.concatenate([np.sin(x), np.cos(x), np.sin(y), np.cos(y)], axis=1)
    return pe.astype(np.float32)


# ----------------------------------------------------------------------------------
# parameter construction (deterministic, synthetic; weights stored per-layer stacked)
# ----------------------------------------------------------------------------------
def init_params(key, *, image_size, patch_size, channels, dim, mlp_dim, depth, heads,
                num_classes, gamma_max_depth=0.005, c_val_0_target=0.6):
    # NOTE: the PyTorch default c_val_0_target=0.9 is unachievable for depth=2
    # (the module itself raises); 0.6 is feasible for this small config.
    ph = patch_size
    Hp = Wp = image_size // ph
    N = Hp * Wp
    patch_dim = channels * ph * ph
    assert dim % heads == 0

    # TAT negative slope (compile-time scalar, same binary search as PyTorch)
    f_net = lambda a: compose(functools.partial(lrelu_cmap, neg_slope=a), 2 * depth)(0.0)
    neg_slope = binary_search(lambda a: c_val_0_target - f_net(a), 0.0, 0.5, 0.0, 1.0)
    out_scale = math.sqrt(2.0 / (1.0 + neg_slope ** 2))

    alpha_max_depth = gamma_to_alpha(gamma_max_depth)

    keys = jax.random.split(key, 2 + depth)
    k_patch, k_head = keys[0], keys[1]
    layer_keys = keys[2:]

    # patch embedding: Conv2d(channels, dim, k=p, s=p) == matmul on flattened patches
    w_patch = jax.random.normal(k_patch, (patch_dim, dim), jnp.float32) * patch_dim ** -0.5
    b_patch = jnp.zeros((1, dim), jnp.float32)
    pe = jnp.asarray(posemb_sincos_2d(dim, Hp, Wp))

    def suo_linear(k, fan_in, fan_out):
        # SUO-style deterministic orthogonal init (gain = max(sqrt(in/out), 1))
        scale = max(math.sqrt(fan_in / fan_out), 1.0)
        return jax.nn.initializers.orthogonal(scale)(k, (fan_in, fan_out), jnp.float32)

    w_qkv_l, b_qkv_l, dvec_l, bmat_l = [], [], [], []
    w1_l, b1_l, w2_l, b2_l = [], [], [], []
    for d_idx in range(1, depth + 1):
        kq, kf = jax.random.split(layer_keys[d_idx - 1], 2)
        # to_qkv: q-part zero, k/v-part normal(std = dim**-0.5); stored (D, 3D) for x @ W
        w_kv = jax.random.normal(kq, (dim, 2 * dim), jnp.float32) * dim ** -0.5
        w_qkv_l.append(jnp.concatenate([jnp.zeros((dim, dim), jnp.float32), w_kv], axis=1))
        b_qkv_l.append(jnp.zeros((1, 3 * dim), jnp.float32))
        dvec_np, bmat_np = make_attention_buffers(N, d_idx, depth, alpha_max_depth)
        dvec_l.append(jnp.asarray(dvec_np).reshape(N, 1))
        bmat_l.append(jnp.asarray(bmat_np))
        k1, k2 = jax.random.split(kf, 2)
        w1_l.append(suo_linear(k1, dim, mlp_dim))
        b1_l.append(jnp.zeros((1, mlp_dim), jnp.float32))
        w2_l.append(suo_linear(k2, mlp_dim, dim))
        b2_l.append(jnp.zeros((1, dim), jnp.float32))

    w_head = suo_linear(k_head, dim, num_classes)
    b_head = jnp.zeros((1, num_classes), jnp.float32)

    bf16 = jnp.bfloat16
    params = dict(
        # matmul weights in bf16 (MXU native rate, half the DMA bytes);
        # biases / pos-emb / SPA buffers stay fp32 (elementwise path).
        w_patch=w_patch.astype(bf16), b_patch=b_patch, pe=pe,
        w_qkv=jnp.stack(w_qkv_l).astype(bf16),     # (L, D, 3D)
        b_qkv=jnp.stack(b_qkv_l),                  # (L, 1, 3D)
        dvec=jnp.stack(dvec_l),                    # (L, N, 1)
        bmat=jnp.stack(bmat_l),                    # (L, N, N)
        w1=jnp.stack(w1_l).astype(bf16),           # (L, D, M)
        b1=jnp.stack(b1_l),                        # (L, 1, M)
        w2=jnp.stack(w2_l).astype(bf16),           # (L, M, D)
        b2=jnp.stack(b2_l),                        # (L, 1, D)
        w_head=w_head.astype(bf16), b_head=b_head)

    static = dict(heads=heads, dim_head=dim // heads, neg_slope=neg_slope,
                  out_scale=out_scale, patch=patch_size, Hp=Hp, Wp=Wp, N=N,
                  dim=dim, mlp_dim=mlp_dim, num_classes=num_classes,
                  patch_dim=patch_dim, depth=depth)
    return params, static


# ----------------------------------------------------------------------------------
# helpers
# ----------------------------------------------------------------------------------
def _trelu(x, neg_slope, out_scale):
    return out_scale * jnp.where(x >= 0, x, neg_slope * x)


def _patchify(img, p, Hp, Wp):
    # Non-overlapping patch extraction == Conv2d(stride=kernel) flattening (NCHW order).
    # TODO(synk): could be folded into the kernel via an (Hp, Wp) index_map to avoid
    # materializing a second copy of the image in HBM.
    B, C = img.shape[0], img.shape[1]
    x = img.reshape(B, C, Hp, p, Wp, p).transpose(0, 2, 4, 1, 3, 5)
    return x.reshape(B, Hp * Wp, C * p * p)


def _pick_batch_tile(batch):
    if batch <= 8:
        return batch
    for bt in (16, 8):
        if batch % bt == 0:
            return bt
    return batch


# ----------------------------------------------------------------------------------
# the fused Pallas kernel: patch-embed -> depth x (SPA attention + TReLU MLP) -> head
# ----------------------------------------------------------------------------------
def _fused_vit_kernel(xp_ref, wp_ref, bp_ref, pe_ref,
                      wqkv_ref, bqkv_ref, dvec_ref, bmat_ref,
                      w1_ref, b1_ref, w2_ref, b2_ref,
                      wh_ref, bh_ref,
                      o_ref, x_scr,
                      *, bt, n_tok, dim, heads, dim_head, scale,
                      neg_slope, out_scale):
    layer = pl.program_id(1)
    n_layers = pl.num_programs(1)
    rows = bt * n_tok
    bf16, f32 = jnp.bfloat16, jnp.float32

    # ---- layer 0 prologue: patch embedding + sincos positional embedding ----------
    @pl.when(layer == 0)
    def _():
        patches = xp_ref[...].reshape(rows, -1).astype(bf16)          # (bt*N, patch_dim)
        emb = jnp.dot(patches, wp_ref[...], preferred_element_type=f32)
        x_scr[...] = emb.reshape(bt, n_tok, dim) + bp_ref[...] + pe_ref[...]

    x = x_scr[...].reshape(rows, dim)                                 # fp32, VMEM-resident

    # ---- SPA attention: additive log-kernel mask B, per-query scaling d -----------
    qkv = jnp.dot(x.astype(bf16), wqkv_ref[...],
                  preferred_element_type=f32) + bqkv_ref[...]         # (bt*N, 3D) fp32

    def gather_heads(col0):
        # lane slab (bt*N, D) -> (heads*bt, N, dim_head) with heads on the batch axis
        parts = [qkv[:, col0 + h * dim_head: col0 + (h + 1) * dim_head]
                 .reshape(bt, n_tok, dim_head) for h in range(heads)]
        return jnp.concatenate(parts, axis=0)

    q = gather_heads(0) * scale
    k = gather_heads(dim)
    v = gather_heads(2 * dim)

    s = jnp.einsum("bqd,bkd->bqk", q.astype(bf16), k.astype(bf16),
                   preferred_element_type=f32)                        # (heads*bt, N, N)
    s = s + bmat_ref[...]
    m = jnp.max(s, axis=-1, keepdims=True)
    p = jnp.exp(s - m)
    denom = jnp.sum(p, axis=-1, keepdims=True)
    # fold the per-query SPA scaling d into the (EUP) approximate reciprocal
    p = p * (dvec_ref[...] * pl.reciprocal(denom, approx=True))
    o = jnp.einsum("bqk,bkd->bqd", p.astype(bf16), v.astype(bf16),
                   preferred_element_type=f32)                        # (heads*bt, N, dh)
    att = jnp.concatenate([o[h * bt:(h + 1) * bt] for h in range(heads)], axis=-1)
    att = att.reshape(rows, dim)                                      # (bt*N, D)

    # ---- MLP (TReLU after both linears; no residual / LayerNorm by design) --------
    h1 = jnp.dot(att.astype(bf16), w1_ref[...], preferred_element_type=f32) + b1_ref[...]
    h1 = _trelu(h1, neg_slope, out_scale)
    h2 = jnp.dot(h1.astype(bf16), w2_ref[...], preferred_element_type=f32) + b2_ref[...]
    x_new = _trelu(h2, neg_slope, out_scale).reshape(bt, n_tok, dim)
    x_scr[...] = x_new

    # ---- final-layer epilogue: mean pool over tokens + classification head --------
    @pl.when(layer == n_layers - 1)
    def _():
        pooled = jnp.mean(x_new, axis=1)                              # (bt, D)
        o_ref[...] = jnp.dot(pooled.astype(bf16), wh_ref[...],
                             preferred_element_type=f32) + bh_ref[...]


# ----------------------------------------------------------------------------------
# forward pass wrapper
# ----------------------------------------------------------------------------------
def simplest_vit_forward(img, params, static, batch_tile=None):
    B = img.shape[0]
    p, Hp, Wp = static["patch"], static["Hp"], static["Wp"]
    N, D, M = static["N"], static["dim"], static["mlp_dim"]
    heads, dim_head = static["heads"], static["dim_head"]
    C = static["num_classes"]
    patch_dim = static["patch_dim"]
    depth = params["w_qkv"].shape[0]

    bt = batch_tile if batch_tile is not None else _pick_batch_tile(B)
    assert B % bt == 0 and (bt == B or bt % 8 == 0)

    xp = _patchify(img, p, Hp, Wp)                                    # (B, N, patch_dim)

    kernel = functools.partial(
        _fused_vit_kernel, bt=bt, n_tok=N, dim=D, heads=heads, dim_head=dim_head,
        scale=dim_head ** -0.5, neg_slope=static["neg_slope"],
        out_scale=static["out_scale"])

    # rough VMEM footprint: double-buffered blocks + scratch; only raise the scoped
    # limit if the 32 MiB default would not fit (v6e has 128 MiB physical).
    def _nbytes(shape, dt):
        return int(np.prod(shape)) * np.dtype(dt).itemsize
    blocks = [((bt, N, patch_dim), xp.dtype), ((patch_dim, D), params["w_patch"].dtype),
              ((1, D), jnp.float32), ((N, D), jnp.float32),
              ((D, 3 * D), params["w_qkv"].dtype), ((1, 3 * D), jnp.float32),
              ((N, 1), jnp.float32), ((N, N), jnp.float32),
              ((D, M), params["w1"].dtype), ((1, M), jnp.float32),
              ((M, D), params["w2"].dtype), ((1, D), jnp.float32),
              ((D, C), params["w_head"].dtype), ((1, C), jnp.float32),
              ((bt, C), jnp.float32)]
    vmem_need = _nbytes((bt, N, D), jnp.float32) + sum(2 * _nbytes(s, d) for s, d in blocks)
    cp_kwargs = dict(dimension_semantics=("parallel", "arbitrary"))
    if vmem_need > 32 * 1024 * 1024:
        cp_kwargs["vmem_limit_bytes"] = int(min(vmem_need * 5 // 4, 112 * 1024 * 1024))

    out = pl.pallas_call(
        kernel,
        out_shape=jax.ShapeDtypeStruct((B, C), jnp.float32),
        grid=(B // bt, depth),
        in_specs=[
            pl.BlockSpec((bt, N, patch_dim), lambda b, d: (b, 0, 0)),   # patches
            pl.BlockSpec((patch_dim, D), lambda b, d: (0, 0)),          # w_patch
            pl.BlockSpec((1, D), lambda b, d: (0, 0)),                  # b_patch
            pl.BlockSpec((N, D), lambda b, d: (0, 0)),                  # pos-emb
            pl.BlockSpec((None, D, 3 * D), lambda b, d: (d, 0, 0)),     # w_qkv[d]
            pl.BlockSpec((None, 1, 3 * D), lambda b, d: (d, 0, 0)),     # b_qkv[d]
            pl.BlockSpec((None, N, 1), lambda b, d: (d, 0, 0)),         # dvec[d]
            pl.BlockSpec((None, N, N), lambda b, d: (d, 0, 0)),         # bmat[d]
            pl.BlockSpec((None, D, M), lambda b, d: (d, 0, 0)),         # w1[d]
            pl.BlockSpec((None, 1, M), lambda b, d: (d, 0, 0)),         # b1[d]
            pl.BlockSpec((None, M, D), lambda b, d: (d, 0, 0)),         # w2[d]
            pl.BlockSpec((None, 1, D), lambda b, d: (d, 0, 0)),         # b2[d]
            pl.BlockSpec((D, C), lambda b, d: (0, 0)),                  # w_head
            pl.BlockSpec((1, C), lambda b, d: (0, 0)),                  # b_head
        ],
        out_specs=pl.BlockSpec((bt, C), lambda b, d: (b, 0)),
        scratch_shapes=[pltpu.VMEM((bt, N, D), jnp.float32)],
        compiler_params=pltpu.CompilerParams(**cp_kwargs),
    )(xp, params["w_patch"], params["b_patch"], params["pe"],
      params["w_qkv"], params["b_qkv"], params["dvec"], params["bmat"],
      params["w1"], params["b1"], params["w2"], params["b2"],
      params["w_head"], params["b_head"])
    return out


# ----------------------------------------------------------------------------------
# pure-JAX reference with matching bf16 rounding points (for numerical validation)
# ----------------------------------------------------------------------------------
def _bf16_round(t):
    return t.astype(jnp.bfloat16).astype(jnp.float32)


def reference_forward(img, params, static):
    B = img.shape[0]
    p, Hp, Wp = static["patch"], static["Hp"], static["Wp"]
    N, D = static["N"], static["dim"]
    heads, dh = static["heads"], static["dim_head"]
    ns, osc = static["neg_slope"], static["out_scale"]
    scale = dh ** -0.5
    f32 = jnp.float32

    xp = _patchify(img, p, Hp, Wp)
    x = _bf16_round(xp) @ params["w_patch"].astype(f32) + params["b_patch"] + params["pe"]
    L = params["w_qkv"].shape[0]
    for l in range(L):
        qkv = _bf16_round(x) @ params["w_qkv"][l].astype(f32) + params["b_qkv"][l]
        q, k, v = jnp.split(qkv, 3, axis=-1)
        toh = lambda t: t.reshape(B, N, heads, dh).transpose(0, 2, 1, 3)
        q, k, v = toh(q), toh(k), toh(v)
        s = jnp.einsum("bhqd,bhkd->bhqk", _bf16_round(q * scale), _bf16_round(k))
        s = s + params["bmat"][l]
        p_att = jax.nn.softmax(s, axis=-1) * params["dvec"][l].reshape(1, 1, N, 1)
        o = jnp.einsum("bhqk,bhkd->bhqd", _bf16_round(p_att), _bf16_round(v))
        att = o.transpose(0, 2, 1, 3).reshape(B, N, D)
        h1 = _trelu(_bf16_round(att) @ params["w1"][l].astype(f32) + params["b1"][l], ns, osc)
        x = _trelu(_bf16_round(h1) @ params["w2"][l].astype(f32) + params["b2"][l], ns, osc)
    pooled = x.mean(axis=1)
    return _bf16_round(pooled) @ params["w_head"].astype(f32) + params["b_head"]


# ----------------------------------------------------------------------------------
if __name__ == "__main__":
    cfg = dict(image_size=16, patch_size=4, channels=3, dim=32, mlp_dim=64,
               depth=2, heads=4, num_classes=10)

    key = jax.random.PRNGKey(0)
    k_params, k_img = jax.random.split(key)
    params, static = init_params(k_params, **cfg)

    img = jax.random.normal(
        k_img, (2, cfg["channels"], cfg["image_size"], cfg["image_size"]), jnp.float32)

    out = jax.block_until_ready(simplest_vit_forward(img, params, static))
    ref = jax.block_until_ready(reference_forward(img, params, static))

    assert out.shape == (2, cfg["num_classes"])
    assert bool(jnp.all(jnp.isfinite(out)))
    np.testing.assert_allclose(np.asarray(out), np.asarray(ref), atol=2e-2, rtol=2e-2)
    print("KERNEL_OK")
</pallas_src>

<mosaic_0001>
module attributes {stable_mosaic.version = 11 : i64} {
  func.func @_fused_vit_kernel(%arg0: i32, %arg1: i32, %arg2: memref<2x16x48xf32, #tpu.memory_space<vmem>>, %arg3: memref<48x32xbf16, #tpu.memory_space<vmem>>, %arg4: memref<1x32xf32, #tpu.memory_space<vmem>>, %arg5: memref<16x32xf32, #tpu.memory_space<vmem>>, %arg6: memref<1x32x96xbf16, #tpu.memory_space<vmem>>, %arg7: memref<1x1x96xf32, #tpu.memory_space<vmem>>, %arg8: memref<1x16x1xf32, #tpu.memory_space<vmem>>, %arg9: memref<1x16x16xf32, #tpu.memory_space<vmem>>, %arg10: memref<1x32x64xbf16, #tpu.memory_space<vmem>>, %arg11: memref<1x1x64xf32, #tpu.memory_space<vmem>>, %arg12: memref<1x64x32xbf16, #tpu.memory_space<vmem>>, %arg13: memref<1x1x32xf32, #tpu.memory_space<vmem>>, %arg14: memref<32x10xbf16, #tpu.memory_space<vmem>>, %arg15: memref<1x10xf32, #tpu.memory_space<vmem>>, %arg16: memref<2x10xf32, #tpu.memory_space<vmem>>, %arg17: memref<2x16x32xf32, #tpu.memory_space<vmem>>) attributes {dimension_semantics = [#tpu.dimension_semantics<parallel>, #tpu.dimension_semantics<arbitrary>], iteration_bounds = array<i64: 1, 2>, scalar_prefetch = 0 : i64, scratch_operands = 1 : i64, tpu.core_type = #tpu.core_type<tc>, window_params = [{transform_indices = @transform_0, window_bounds = array<i64: 2, 16, 48>}, {pipeline_mode = #tpu.pipeline_mode<synchronous>, transform_indices = @transform_1, window_bounds = array<i64: 48, 32>}, {pipeline_mode = #tpu.pipeline_mode<synchronous>, transform_indices = @transform_2, window_bounds = array<i64: 1, 32>}, {pipeline_mode = #tpu.pipeline_mode<synchronous>, transform_indices = @transform_3, window_bounds = array<i64: 16, 32>}, {transform_indices = @transform_4, window_bounds = array<i64: 1, 32, 96>}, {transform_indices = @transform_5, window_bounds = array<i64: 1, 1, 96>}, {transform_indices = @transform_6, window_bounds = array<i64: 1, 16, 1>}, {transform_indices = @transform_7, window_bounds = array<i64: 1, 16, 16>}, {transform_indices = @transform_8, window_bounds = array<i64: 1, 32, 64>}, {transform_indices = @transform_9, window_bounds = array<i64: 1, 1, 64>}, {transform_indices = @transform_10, window_bounds = array<i64: 1, 64, 32>}, {transform_indices = @transform_11, window_bounds = array<i64: 1, 1, 32>}, {pipeline_mode = #tpu.pipeline_mode<synchronous>, transform_indices = @transform_12, window_bounds = array<i64: 32, 10>}, {pipeline_mode = #tpu.pipeline_mode<synchronous>, transform_indices = @transform_13, window_bounds = array<i64: 1, 10>}, {transform_indices = @transform_14, window_bounds = array<i64: 2, 10>}]} {
    %c0_i32 = arith.constant 0 : i32
    %0 = arith.cmpi eq, %arg1, %c0_i32 : i32
    %1 = arith.extui %0 : i1 to i32
    %c0_i32_0 = arith.constant 0 : i32
    %2 = arith.cmpi ne, %1, %c0_i32_0 : i32
    scf.if %2 {
      %c0_44 = arith.constant 0 : index
      %c0_45 = arith.constant 0 : index
      %c0_46 = arith.constant 0 : index
      %109 = vector.load %arg2[%c0_44, %c0_45, %c0_46] : memref<2x16x48xf32, #tpu.memory_space<vmem>>, vector<2x16x48xf32>
      %110 = vector.shape_cast %109 : vector<2x16x48xf32> to vector<32x48xf32>
      %111 = arith.truncf %110 : vector<32x48xf32> to vector<32x48xbf16>
      %c0_47 = arith.constant 0 : index
      %c0_48 = arith.constant 0 : index
      %112 = vector.load %arg3[%c0_47, %c0_48] : memref<48x32xbf16, #tpu.memory_space<vmem>>, vector<48x32xbf16>
      %cst_49 = arith.constant dense<0.000000e+00> : vector<32x32xf32>
      %113 = tpu.matmul %111, %112, %cst_49 {dimension_numbers = #tpu.dot_dimension_numbers<[1], [0], [0], [1], [0, 0, 1, 1], [], []>} : vector<32x48xbf16>, vector<48x32xbf16>, vector<32x32xf32> -> vector<32x32xf32>
      %114 = vector.shape_cast %113 : vector<32x32xf32> to vector<2x16x32xf32>
      %c0_50 = arith.constant 0 : index
      %c0_51 = arith.constant 0 : index
      %115 = vector.load %arg4[%c0_50, %c0_51] : memref<1x32xf32, #tpu.memory_space<vmem>>, vector<1x32xf32>
      %116 = vector.shape_cast %115 : vector<1x32xf32> to vector<1x1x32xf32>
      %117 = vector.broadcast %116 : vector<1x1x32xf32> to vector<2x16x32xf32>
      %118 = arith.addf %114, %117 : vector<2x16x32xf32>
      %c0_52 = arith.constant 0 : index
      %c0_53 = arith.constant 0 : index
      %119 = vector.load %arg5[%c0_52, %c0_53] : memref<16x32xf32, #tpu.memory_space<vmem>>, vector<16x32xf32>
      %120 = vector.shape_cast %119 : vector<16x32xf32> to vector<1x16x32xf32>
      %121 = vector.broadcast %120 : vector<1x16x32xf32> to vector<2x16x32xf32>
      %122 = arith.addf %118, %121 : vector<2x16x32xf32>
      %c0_54 = arith.constant 0 : index
      %c0_55 = arith.constant 0 : index
      %c0_56 = arith.constant 0 : index
      %123 = vector.load %arg17[%c0_54, %c0_55, %c0_56] : memref<2x16x32xf32, #tpu.memory_space<vmem>>, vector<2x16x32xf32>
      tpu.vector_store %arg17[%c0_54, %c0_55, %c0_56], %122 {strides = array<i32>} : memref<2x16x32xf32, #tpu.memory_space<vmem>>, vector<2x16x32xf32>,
    } else {
    }
    %c0 = arith.constant 0 : index
    %c0_1 = arith.constant 0 : index
    %c0_2 = arith.constant 0 : index
    %3 = vector.load %arg17[%c0, %c0_1, %c0_2] : memref<2x16x32xf32, #tpu.memory_space<vmem>>, vector<2x16x32xf32>
    %4 = vector.shape_cast %3 : vector<2x16x32xf32> to vector<32x32xf32>
    %5 = arith.truncf %4 : vector<32x32xf32> to vector<32x32xbf16>
    %c0_3 = arith.constant 0 : index
    %c0_4 = arith.constant 0 : index
    %c0_5 = arith.constant 0 : index
    %6 = vector.load %arg6[%c0_3, %c0_4, %c0_5] : memref<1x32x96xbf16, #tpu.memory_space<vmem>>, vector<1x32x96xbf16>
    %7 = vector.shape_cast %6 : vector<1x32x96xbf16> to vector<32x96xbf16>
    %cst = arith.constant dense<0.000000e+00> : vector<32x96xf32>
    %8 = tpu.matmul %5, %7, %cst {dimension_numbers = #tpu.dot_dimension_numbers<[1], [0], [0], [1], [0, 0, 1, 1], [], []>} : vector<32x32xbf16>, vector<32x96xbf16>, vector<32x96xf32> -> vector<32x96xf32>
    %c0_6 = arith.constant 0 : index
    %c0_7 = arith.constant 0 : index
    %c0_8 = arith.constant 0 : index
    %9 = vector.load %arg7[%c0_6, %c0_7, %c0_8] : memref<1x1x96xf32, #tpu.memory_space<vmem>>, vector<1x1x96xf32>
    %10 = vector.shape_cast %9 : vector<1x1x96xf32> to vector<1x96xf32>
    %11 = vector.broadcast %10 : vector<1x96xf32> to vector<32x96xf32>
    %12 = arith.addf %8, %11 : vector<32x96xf32>
    %13 = vector.extract_strided_slice %12 {offsets = [0, 0], sizes = [32, 8], strides = [1, 1]} : vector<32x96xf32> to vector<32x8xf32>
    %14 = vector.shape_cast %13 : vector<32x8xf32> to vector<2x16x8xf32>
    %15 = vector.extract_strided_slice %12 {offsets = [0, 8], sizes = [32, 8], strides = [1, 1]} : vector<32x96xf32> to vector<32x8xf32>
    %16 = vector.shape_cast %15 : vector<32x8xf32> to vector<2x16x8xf32>
    %17 = vector.extract_strided_slice %12 {offsets = [0, 16], sizes = [32, 8], strides = [1, 1]} : vector<32x96xf32> to vector<32x8xf32>
    %18 = vector.shape_cast %17 : vector<32x8xf32> to vector<2x16x8xf32>
    %19 = vector.extract_strided_slice %12 {offsets = [0, 24], sizes = [32, 8], strides = [1, 1]} : vector<32x96xf32> to vector<32x8xf32>
    %20 = vector.shape_cast %19 : vector<32x8xf32> to vector<2x16x8xf32>
    %21 = tpu.concatenate %14, %16, %18, %20 in 0 : vector<2x16x8xf32>, vector<2x16x8xf32>, vector<2x16x8xf32>, vector<2x16x8xf32> -> vector<8x16x8xf32>
    %cst_9 = arith.constant 0.353553385 : f32
    %22 = vector.broadcast %cst_9 : f32 to vector<8x16x8xf32>
    %23 = arith.mulf %21, %22 : vector<8x16x8xf32>
    %24 = vector.extract_strided_slice %12 {offsets = [0, 32], sizes = [32, 8], strides = [1, 1]} : vector<32x96xf32> to vector<32x8xf32>
    %25 = vector.shape_cast %24 : vector<32x8xf32> to vector<2x16x8xf32>
    %26 = vector.extract_strided_slice %12 {offsets = [0, 40], sizes = [32, 8], strides = [1, 1]} : vector<32x96xf32> to vector<32x8xf32>
    %27 = vector.shape_cast %26 : vector<32x8xf32> to vector<2x16x8xf32>
    %28 = vector.extract_strided_slice %12 {offsets = [0, 48], sizes = [32, 8], strides = [1, 1]} : vector<32x96xf32> to vector<32x8xf32>
    %29 = vector.shape_cast %28 : vector<32x8xf32> to vector<2x16x8xf32>
    %30 = vector.extract_strided_slice %12 {offsets = [0, 56], sizes = [32, 8], strides = [1, 1]} : vector<32x96xf32> to vector<32x8xf32>
    %31 = vector.shape_cast %30 : vector<32x8xf32> to vector<2x16x8xf32>
    %32 = tpu.concatenate %25, %27, %29, %31 in 0 : vector<2x16x8xf32>, vector<2x16x8xf32>, vector<2x16x8xf32>, vector<2x16x8xf32> -> vector<8x16x8xf32>
    %33 = vector.extract_strided_slice %12 {offsets = [0, 64], sizes = [32, 8], strides = [1, 1]} : vector<32x96xf32> to vector<32x8xf32>
    %34 = vector.shape_cast %33 : vector<32x8xf32> to vector<2x16x8xf32>
    %35 = vector.extract_strided_slice %12 {offsets = [0, 72], sizes = [32, 8], strides = [1, 1]} : vector<32x96xf32> to vector<32x8xf32>
    %36 = vector.shape_cast %35 : vector<32x8xf32> to vector<2x16x8xf32>
    %37 = vector.extract_strided_slice %12 {offsets = [0, 80], sizes = [32, 8], strides = [1, 1]} : vector<32x96xf32> to vector<32x8xf32>
    %38 = vector.shape_cast %37 : vector<32x8xf32> to vector<2x16x8xf32>
    %39 = vector.extract_strided_slice %12 {offsets = [0, 88], sizes = [32, 8], strides = [1, 1]} : vector<32x96xf32> to vector<32x8xf32>
    %40 = vector.shape_cast %39 : vector<32x8xf32> to vector<2x16x8xf32>
    %41 = tpu.concatenate %34, %36, %38, %40 in 0 : vector<2x16x8xf32>, vector<2x16x8xf32>, vector<2x16x8xf32>, vector<2x16x8xf32> -> vector<8x16x8xf32>
    %42 = arith.truncf %23 : vector<8x16x8xf32> to vector<8x16x8xbf16>
    %43 = arith.truncf %32 : vector<8x16x8xf32> to vector<8x16x8xbf16>
    "tpu.trace_start"() <{level = 10 : i32, message = "bqd,bkd->bqk"}> : () -> ()
    %cst_10 = arith.constant dense<0.000000e+00> : vector<8x16x16xf32>
    %44 = tpu.matmul %42, %43, %cst_10 {dimension_numbers = #tpu.dot_dimension_numbers<[2], [2], [1], [1], [0, 0, 0, 1, 1, 1], [0], [0]>} : vector<8x16x8xbf16>, vector<8x16x8xbf16>, vector<8x16x16xf32> -> vector<8x16x16xf32>
    "tpu.trace_stop"() : () -> ()
    %c0_11 = arith.constant 0 : index
    %c0_12 = arith.constant 0 : index
    %c0_13 = arith.constant 0 : index
    %45 = vector.load %arg9[%c0_11, %c0_12, %c0_13] : memref<1x16x16xf32, #tpu.memory_space<vmem>>, vector<1x16x16xf32>
    %46 = vector.shape_cast %45 : vector<1x16x16xf32> to vector<16x16xf32>
    %47 = vector.shape_cast %46 : vector<16x16xf32> to vector<1x16x16xf32>
    %48 = vector.broadcast %47 : vector<1x16x16xf32> to vector<8x16x16xf32>
    %49 = arith.addf %44, %48 : vector<8x16x16xf32>
    %cst_14 = arith.constant dense<0xFF800000> : vector<8x16xf32>
    %50 = vector.multi_reduction <maximumf>, %49, %cst_14 [2] : vector<8x16x16xf32> to vector<8x16xf32>
    %51 = vector.shape_cast %50 : vector<8x16xf32> to vector<8x16x1xf32>
    %52 = vector.broadcast %51 : vector<8x16x1xf32> to vector<8x16x16xf32>
    %53 = arith.subf %49, %52 : vector<8x16x16xf32>
    %54 = math.exp %53 : vector<8x16x16xf32>
    %cst_15 = arith.constant dense<0.000000e+00> : vector<8x16xf32>
    %55 = vector.multi_reduction <add>, %54, %cst_15 [2] : vector<8x16x16xf32> to vector<8x16xf32>
    %56 = vector.shape_cast %55 : vector<8x16xf32> to vector<8x16x1xf32>
    %c0_16 = arith.constant 0 : index
    %c0_17 = arith.constant 0 : index
    %c0_18 = arith.constant 0 : index
    %57 = vector.load %arg8[%c0_16, %c0_17, %c0_18] : memref<1x16x1xf32, #tpu.memory_space<vmem>>, vector<1x16x1xf32>
    %58 = vector.shape_cast %57 : vector<1x16x1xf32> to vector<16x1xf32>
    %59 = tpu.reciprocal %56 {approx = true} : vector<8x16x1xf32> -> vector<8x16x1xf32>
    %60 = vector.shape_cast %58 : vector<16x1xf32> to vector<1x16x1xf32>
    %61 = vector.broadcast %60 : vector<1x16x1xf32> to vector<8x16x1xf32>
    %62 = arith.mulf %61, %59 : vector<8x16x1xf32>
    %63 = vector.broadcast %62 : vector<8x16x1xf32> to vector<8x16x16xf32>
    %64 = arith.mulf %54, %63 : vector<8x16x16xf32>
    %65 = arith.truncf %64 : vector<8x16x16xf32> to vector<8x16x16xbf16>
    %66 = arith.truncf %41 : vector<8x16x8xf32> to vector<8x16x8xbf16>
    "tpu.trace_start"() <{level = 10 : i32, message = "bqk,bkd->bqd"}> : () -> ()
    %cst_19 = arith.constant dense<0.000000e+00> : vector<8x16x8xf32>
    %67 = tpu.matmul %65, %66, %cst_19 {dimension_numbers = #tpu.dot_dimension_numbers<[2], [1], [1], [2], [0, 0, 0, 1, 1, 2], [0], [0]>} : vector<8x16x16xbf16>, vector<8x16x8xbf16>, vector<8x16x8xf32> -> vector<8x16x8xf32>
    "tpu.trace_stop"() : () -> ()
    %68 = vector.extract_strided_slice %67 {offsets = [0, 0, 0], sizes = [2, 16, 8], strides = [1, 1, 1]} : vector<8x16x8xf32> to vector<2x16x8xf32>
    %69 = vector.extract_strided_slice %67 {offsets = [2, 0, 0], sizes = [2, 16, 8], strides = [1, 1, 1]} : vector<8x16x8xf32> to vector<2x16x8xf32>
    %70 = vector.extract_strided_slice %67 {offsets = [4, 0, 0], sizes = [2, 16, 8], strides = [1, 1, 1]} : vector<8x16x8xf32> to vector<2x16x8xf32>
    %71 = vector.extract_strided_slice %67 {offsets = [6, 0, 0], sizes = [2, 16, 8], strides = [1, 1, 1]} : vector<8x16x8xf32> to vector<2x16x8xf32>
    %72 = tpu.concatenate %68, %69, %70, %71 in 2 : vector<2x16x8xf32>, vector<2x16x8xf32>, vector<2x16x8xf32>, vector<2x16x8xf32> -> vector<2x16x32xf32>
    %73 = vector.shape_cast %72 : vector<2x16x32xf32> to vector<32x32xf32>
    %74 = arith.truncf %73 : vector<32x32xf32> to vector<32x32xbf16>
    %c0_20 = arith.constant 0 : index
    %c0_21 = arith.constant 0 : index
    %c0_22 = arith.constant 0 : index
    %75 = vector.load %arg10[%c0_20, %c0_21, %c0_22] : memref<1x32x64xbf16, #tpu.memory_space<vmem>>, vector<1x32x64xbf16>
    %76 = vector.shape_cast %75 : vector<1x32x64xbf16> to vector<32x64xbf16>
    %cst_23 = arith.constant dense<0.000000e+00> : vector<32x64xf32>
    %77 = tpu.matmul %74, %76, %cst_23 {dimension_numbers = #tpu.dot_dimension_numbers<[1], [0], [0], [1], [0, 0, 1, 1], [], []>} : vector<32x32xbf16>, vector<32x64xbf16>, vector<32x64xf32> -> vector<32x64xf32>
    %c0_24 = arith.constant 0 : index
    %c0_25 = arith.constant 0 : index
    %c0_26 = arith.constant 0 : index
    %78 = vector.load %arg11[%c0_24, %c0_25, %c0_26] : memref<1x1x64xf32, #tpu.memory_space<vmem>>, vector<1x1x64xf32>
    %79 = vector.shape_cast %78 : vector<1x1x64xf32> to vector<1x64xf32>
    %80 = vector.broadcast %79 : vector<1x64xf32> to vector<32x64xf32>
    %81 = arith.addf %77, %80 : vector<32x64xf32>
    %cst_27 = arith.constant 0.000000e+00 : f32
    %82 = vector.broadcast %cst_27 : f32 to vector<32x64xf32>
    %83 = arith.cmpf oge, %81, %82 : vector<32x64xf32>
    %cst_28 = arith.constant 0.109162956 : f32
    %84 = vector.broadcast %cst_28 : f32 to vector<32x64xf32>
    %85 = arith.mulf %84, %81 : vector<32x64xf32>
    %86 = arith.select %83, %81, %85 : vector<32x64xi1>, vector<32x64xf32>
    %cst_29 = arith.constant 1.40586185 : f32
    %87 = vector.broadcast %cst_29 : f32 to vector<32x64xf32>
    %88 = arith.mulf %87, %86 : vector<32x64xf32>
    %89 = arith.truncf %88 : vector<32x64xf32> to vector<32x64xbf16>
    %c0_30 = arith.constant 0 : index
    %c0_31 = arith.constant 0 : index
    %c0_32 = arith.constant 0 : index
    %90 = vector.load %arg12[%c0_30, %c0_31, %c0_32] : memref<1x64x32xbf16, #tpu.memory_space<vmem>>, vector<1x64x32xbf16>
    %91 = vector.shape_cast %90 : vector<1x64x32xbf16> to vector<64x32xbf16>
    %cst_33 = arith.constant dense<0.000000e+00> : vector<32x32xf32>
    %92 = tpu.matmul %89, %91, %cst_33 {dimension_numbers = #tpu.dot_dimension_numbers<[1], [0], [0], [1], [0, 0, 1, 1], [], []>} : vector<32x64xbf16>, vector<64x32xbf16>, vector<32x32xf32> -> vector<32x32xf32>
    %c0_34 = arith.constant 0 : index
    %c0_35 = arith.constant 0 : index
    %c0_36 = arith.constant 0 : index
    %93 = vector.load %arg13[%c0_34, %c0_35, %c0_36] : memref<1x1x32xf32, #tpu.memory_space<vmem>>, vector<1x1x32xf32>
    %94 = vector.shape_cast %93 : vector<1x1x32xf32> to vector<1x32xf32>
    %95 = vector.broadcast %94 : vector<1x32xf32> to vector<32x32xf32>
    %96 = arith.addf %92, %95 : vector<32x32xf32>
    %cst_37 = arith.constant 0.000000e+00 : f32
    %97 = vector.broadcast %cst_37 : f32 to vector<32x32xf32>
    %98 = arith.cmpf oge, %96, %97 : vector<32x32xf32>
    %cst_38 = arith.constant 0.109162956 : f32
    %99 = vector.broadcast %cst_38 : f32 to vector<32x32xf32>
    %100 = arith.mulf %99, %96 : vector<32x32xf32>
    %101 = arith.select %98, %96, %100 : vector<32x32xi1>, vector<32x32xf32>
    %cst_39 = arith.constant 1.40586185 : f32
    %102 = vector.broadcast %cst_39 : f32 to vector<32x32xf32>
    %103 = arith.mulf %102, %101 : vector<32x32xf32>
    %104 = vector.shape_cast %103 : vector<32x32xf32> to vector<2x16x32xf32>
    %c0_40 = arith.constant 0 : index
    %c0_41 = arith.constant 0 : index
    %c0_42 = arith.constant 0 : index
    %105 = vector.load %arg17[%c0_40, %c0_41, %c0_42] : memref<2x16x32xf32, #tpu.memory_space<vmem>>, vector<2x16x32xf32>
    tpu.vector_store %arg17[%c0_40, %c0_41, %c0_42], %104 {strides = array<i32>} : memref<2x16x32xf32, #tpu.memory_space<vmem>>, vector<2x16x32xf32>,
    %c1_i32 = arith.constant 1 : i32
    %106 = arith.cmpi eq, %arg1, %c1_i32 : i32
    %107 = arith.extui %106 : i1 to i32
    %c0_i32_43 = arith.constant 0 : i32
    %108 = arith.cmpi ne, %107, %c0_i32_43 : i32
    scf.if %108 {
      %cst_44 = arith.constant dense<0.000000e+00> : vector<2x32xf32>
      %109 = vector.multi_reduction <add>, %104, %cst_44 [1] : vector<2x16x32xf32> to vector<2x32xf32>
      %cst_45 = arith.constant 1.600000e+01 : f32
      %110 = vector.broadcast %cst_45 : f32 to vector<2x32xf32>
      %111 = arith.divf %109, %110 : vector<2x32xf32>
      %112 = arith.truncf %111 : vector<2x32xf32> to vector<2x32xbf16>
      %c0_46 = arith.constant 0 : index
      %c0_47 = arith.constant 0 : index
      %113 = vector.load %arg14[%c0_46, %c0_47] : memref<32x10xbf16, #tpu.memory_space<vmem>>, vector<32x10xbf16>
      %cst_48 = arith.constant dense<0.000000e+00> : vector<2x10xf32>
      %114 = tpu.matmul %112, %113, %cst_48 {dimension_numbers = #tpu.dot_dimension_numbers<[1], [0], [0], [1], [0, 0, 1, 1], [], []>} : vector<2x32xbf16>, vector<32x10xbf16>, vector<2x10xf32> -> vector<2x10xf32>
      %c0_49 = arith.constant 0 : index
      %c0_50 = arith.constant 0 : index
      %115 = vector.load %arg15[%c0_49, %c0_50] : memref<1x10xf32, #tpu.memory_space<vmem>>, vector<1x10xf32>
      %116 = vector.broadcast %115 : vector<1x10xf32> to vector<2x10xf32>
      %117 = arith.addf %114, %116 : vector<2x10xf32>
      %c0_51 = arith.constant 0 : index
      %c0_52 = arith.constant 0 : index
      %118 = vector.load %arg16[%c0_51, %c0_52] : memref<2x10xf32, #tpu.memory_space<vmem>>, vector<2x10xf32>
      tpu.vector_store %arg16[%c0_51, %c0_52], %117 {strides = array<i32>} : memref<2x10xf32, #tpu.memory_space<vmem>>, vector<2x10xf32>,
    } else {
    }
    return
  }
  func.func @transform_0(%arg0: i32, %arg1: i32) -> (i32, i32, i32) {
    %c0_i32 = arith.constant 0 : i32
    %c0_i32_0 = arith.constant 0 : i32
    %c0_i32_1 = arith.constant 0 : i32
    return %arg0, %c0_i32, %c0_i32_0 : i32, i32, i32
  }
  func.func @transform_1(%arg0: i32, %arg1: i32) -> (i32, i32) {
    %c0_i32 = arith.constant 0 : i32
    %c0_i32_0 = arith.constant 0 : i32
    %c0_i32_1 = arith.constant 0 : i32
    return %c0_i32, %c0_i32_0 : i32, i32
  }
  func.func @transform_2(%arg0: i32, %arg1: i32) -> (i32, i32) {
    %c0_i32 = arith.constant 0 : i32
    %c0_i32_0 = arith.constant 0 : i32
    %c0_i32_1 = arith.constant 0 : i32
    return %c0_i32, %c0_i32_0 : i32, i32
  }
  func.func @transform_3(%arg0: i32, %arg1: i32) -> (i32, i32) {
    %c0_i32 = arith.constant 0 : i32
    %c0_i32_0 = arith.constant 0 : i32
    %c0_i32_1 = arith.constant 0 : i32
    return %c0_i32, %c0_i32_0 : i32, i32
  }
  func.func @transform_4(%arg0: i32, %arg1: i32) -> (i32, i32, i32) {
    %c0_i32 = arith.constant 0 : i32
    %c0_i32_0 = arith.constant 0 : i32
    %c0_i32_1 = arith.constant 0 : i32
    return %arg1, %c0_i32, %c0_i32_0 : i32, i32, i32
  }
  func.func @transform_5(%arg0: i32, %arg1: i32) -> (i32, i32, i32) {
    %c0_i32 = arith.constant 0 : i32
    %c0_i32_0 = arith.constant 0 : i32
    %c0_i32_1 = arith.constant 0 : i32
    return %arg1, %c0_i32, %c0_i32_0 : i32, i32, i32
  }
  func.func @transform_6(%arg0: i32, %arg1: i32) -> (i32, i32, i32) {
    %c0_i32 = arith.constant 0 : i32
    %c0_i32_0 = arith.constant 0 : i32
    %c0_i32_1 = arith.constant 0 : i32
    return %arg1, %c0_i32, %c0_i32_0 : i32, i32, i32
  }
  func.func @transform_7(%arg0: i32, %arg1: i32) -> (i32, i32, i32) {
    %c0_i32 = arith.constant 0 : i32
    %c0_i32_0 = arith.constant 0 : i32
    %c0_i32_1 = arith.constant 0 : i32
    return %arg1, %c0_i32, %c0_i32_0 : i32, i32, i32
  }
  func.func @transform_8(%arg0: i32, %arg1: i32) -> (i32, i32, i32) {
    %c0_i32 = arith.constant 0 : i32
    %c0_i32_0 = arith.constant 0 : i32
    %c0_i32_1 = arith.constant 0 : i32
    return %arg1, %c0_i32, %c0_i32_0 : i32, i32, i32
  }
  func.func @transform_9(%arg0: i32, %arg1: i32) -> (i32, i32, i32) {
    %c0_i32 = arith.constant 0 : i32
    %c0_i32_0 = arith.constant 0 : i32
    %c0_i32_1 = arith.constant 0 : i32
    return %arg1, %c0_i32, %c0_i32_0 : i32, i32, i32
  }
  func.func @transform_10(%arg0: i32, %arg1: i32) -> (i32, i32, i32) {
    %c0_i32 = arith.constant 0 : i32
    %c0_i32_0 = arith.constant 0 : i32
    %c0_i32_1 = arith.constant 0 : i32
    return %arg1, %c0_i32, %c0_i32_0 : i32, i32, i32
  }
  func.func @transform_11(%arg0: i32, %arg1: i32) -> (i32, i32, i32) {
    %c0_i32 = arith.constant 0 : i32
    %c0_i32_0 = arith.constant 0 : i32
    %c0_i32_1 = arith.constant 0 : i32
    return %arg1, %c0_i32, %c0_i32_0 : i32, i32, i32
  }
  func.func @transform_12(%arg0: i32, %arg1: i32) -> (i32, i32) {
    %c0_i32 = arith.constant 0 : i32
    %c0_i32_0 = arith.constant 0 : i32
    %c0_i32_1 = arith.constant 0 : i32
    return %c0_i32, %c0_i32_0 : i32, i32
  }
  func.func @transform_13(%arg0: i32, %arg1: i32) -> (i32, i32) {
    %c0_i32 = arith.constant 0 : i32
    %c0_i32_0 = arith.constant 0 : i32
    %c0_i32_1 = arith.constant 0 : i32
    return %c0_i32, %c0_i32_0 : i32, i32
  }
  func.func @transform_14(%arg0: i32, %arg1: i32) -> (i32, i32) {
    %c0_i32 = arith.constant 0 : i32
    %c0_i32_0 = arith.constant 0 : i32
    return %arg0, %c0_i32 : i32, i32
  }
}

</mosaic_0001>

<bundles_post_ra>
// kernel: tpu_custom_call.1
= control target key start
LH: loop header
LB: loop body
LE: loop exit
PB: predicated region body
PF: predicated region fallthrough
CT: control target
= control target key end

     0   :  { %s3573_s0 = inlined_call_operand.vmem [shape: f32[2,16,48], index: 0, kind: input, shape index: {}]   ;;  %s3574_s1 = inlined_call_operand.vmem [shape: bf16[48,32], index: 1, kind: input, shape index: {}]   ;;  %s3575_s2 = inlined_call_operand.vmem [shape: f32[1,32], index: 2, kind: input, shape index: {}]   ;;  %s3576_s3 = inlined_call_operand.vmem [shape: f32[16,32], index: 3, kind: input, shape index: {}]   ;;  %s3577_s4 = inlined_call_operand.vmem [shape: bf16[2,32,96], index: 4, kind: input, shape index: {}]   ;;  %s3578_s5 = inlined_call_operand.vmem [shape: f32[2,1,96], index: 5, kind: input, shape index: {}]   ;;  %s3579_s6 = inlined_call_operand.vmem [shape: f32[2,16,1], index: 6, kind: input, shape index: {}]   ;;  %s3580_s7 = inlined_call_operand.vmem [shape: f32[2,16,16], index: 7, kind: input, shape index: {}]   ;;  %s3581_s8 = inlined_call_operand.vmem [shape: bf16[2,32,64], index: 8, kind: input, shape index: {}]   ;;  %s3582_s9 = inlined_call_operand.vmem [shape: f32[2,1,64], index: 9, kind: input, shape index: {}]   ;;  %s3583_s10 = inlined_call_operand.vmem [shape: bf16[2,64,32], index: 10, kind: input, shape index: {}]   ;;  %s3584_s11 = inlined_call_operand.vmem [shape: f32[2,1,32], index: 11, kind: input, shape index: {}]   ;;  %s3585_s12 = inlined_call_operand.vmem [shape: bf16[32,10], index: 12, kind: input, shape index: {}]   ;;  %s3586_s13 = inlined_call_operand.vmem [shape: f32[1,10], index: 13, kind: input, shape index: {}]   ;;  %s3587_s14 = inlined_call_operand.hbm [shape: f32[2,10], index: 14, kind: output, shape index: {}]  }
   0x1   :  { %3590 = sst [smem:[#allocation9_spill]] %s3577_s4 }
   0x2   :  { %3591 = sst [smem:[#allocation10_spill]] %s3579_s6 }
   0x3   :  { %3592 = sst [smem:[#allocation11_spill]] %s3586_s13 }
   0x4   :  { %3593 = sst [smem:[#allocation12_spill]] %s3587_s14 }
   0x5   :  { %19 = vsyncpa [#allocation4], 0  ;;  %s3034_s29 = smov 0   ;;  %s3036_s30 = smov 0  }
   0x6   :  { %s3038_s15 = smov 0  }
   0x7 LB: > { %3594 = sst [smem:[#allocation6_spill]] %s2939_s30  ;;  %s34_s17 = sadd.s32 1, %s2939_s30  ;;  %s2943_s15 = sphi %s3038_s15, %s25_s15   ;;  %s2939_s30 = sphi %s3036_s30, %s3607_s30   ;;  %s2935_s29 = sphi %s3034_s29, %s3606_s29  }
   0x8   : > { %3595 = sst [smem:[#allocation7_spill]] %s2943_s15  ;;  %p35_p0 = scmp.ge.s32.totalorder %s34_s17, 2 }
   0x9   : > { %p2479_p1 = scmp.ge.s32.totalorder %s2943_s15, 1  ;;  %p501_p2 = scmp.lt.s32.totalorder %s2943_s15, 3 }
   0xa   : > { %s3609_s17 = smov (%p35_p0, %s34_s17), 0 }
   0xb   : > { %3596 = sst [smem:[#allocation8_spill]] %s3609_s17  ;;  %p502_p3 = pnand %p2479_p1, %p501_p2 }
   0xc   : > { %p584_p4 = scmp.lt.s32.totalorder (!%p502_p3), %s2935_s29, 1  ;;  %s3597_s4 = sld [smem:[#allocation9_spill]] (!%p502_p3) }
   0xd   : > { %505 = sbr.rel (%p502_p3) target bundleno = 2356 (0x934), region = 76  ;;  %s3598_s6 = sld [smem:[#allocation10_spill]] (!%p502_p3) }
   0xe   : > { %p2490_p5 = scmp.ne.s32.totalorder (!%p502_p3), %s2935_s29, 0 }
  0x12   : > { %s3057_s18 = scalar_select %p584_p4, %s2935_s29, 1 }
  0x14   : > { %s2539_s19 = sshll.u32 %s3057_s18, 4  ;;  %s609_s23 = scalar_lea.vmem %s3582_s9, %s3057_s18 }
  0x15   : > { %s3067_s25 = scalar_lea.vmem %s3597_s4, %s2539_s19  ;;  %s3072_s28 = scalar_lea.vmem %s3598_s6, %s2539_s19 }
  0x16   : > { %s3077_s30 = scalar_lea.vmem %s3580_s7, %s2539_s19  ;;  %s3082_s20 = scalar_lea.vmem %s3581_s8, %s2539_s19 }
  0x17   : > { %s2543_s24 = sshll.u32 %s3057_s18, 5  ;;  %s617_s16 = scalar_lea.vmem %s3584_s11, %s3057_s18 }
  0x18   : > { %s3092_s26 = scalar_lea.vmem %s3583_s10, %s2543_s24  ;;  %622 = sbr.rel (%p2490_p5) target bundleno = 246 (0xf6), region = 80 }
  0x1d   : > { %v2784_v0 = vld [vmem:[%s3574_s1 + $0x10] sm:$0xff]   ;;  %v2785_v1 = vld [vmem:[%s3574_s1 + $0x8] sm:$0xff]   ;;  %v623_v2 = vld [vmem:[%s3573_s0] sm:$0xff]  ;;  %vm653_vm0 = vcmask 392192   ;;  %vm726_vm1 = vcmask 261120  }
  0x1e   : > { %2598 = vmatprep.subr.bf16.mxu0 %v2784_v0  ;;  %v624_v3 = vld [vmem:[%s3573_s0 + $0x8] sm:$0xff]  ;;  %v2786_v4 = vld [vmem:[%s3574_s1] sm:$0xff]   ;;  %v625_v6 = vld [vmem:[%s3573_s0 + $0x10] sm:$0xff] }
  0x1f   : > { %2599 = vmatpush3.bf16.msra.mxu0 %v2784_v0  ;;  %v627_v5 = vpack.c.bf16 %v624_v3, %v623_v2  ;;  %v626_v7 = vld [vmem:[%s3573_s0 + $0x18] sm:$0xff]  ;;  %v2496_v9 = vld [vmem:[%s3575_s2] ss:$0 sm:$0xff]  ;;  %v721_v17 = vld [vmem:[%s3576_s3 + $0x8] sm:$0xff] }
  0x20   : > { %2600 = vmatprep.subr.bf16.mxu0 %v2785_v1  ;;  %v628_v8 = vpack.c.bf16 %v626_v7, %v625_v6  ;;  %v720_v11 = vld [vmem:[%s3576_s3] sm:$0xff] }
  0x21   : > { %2604 = vmatprep.mubr.msk.bf16.mxu0 %vm653_vm0, %v627_v5 }
  0x23   : > { %2601 = vmatpush3.bf16.msra.mxu0 %v2785_v1 }
  0x24   : > { %2602 = vmatprep.subr.bf16.mxu0 %v2786_v4 }
  0x27   : > { %2603 = vmatpush3.bf16.msra.mxu0 %v2786_v4 }
  0x2a   : > { %2605 = vmatmul.mubr.msk.bf16.vlgmr.msra.gmra.mxu0 %vm653_vm0, %v628_v8 }
  0xea   : > { %v2606_v10 = vpop.f32.mrf.mxu0 }
  0xeb   : > { %v718_v12 = vadd.f32 %v2606_v10, %v2496_v9 }
  0xec   : > { %v694_v13 = vpop.f32.mrf.mxu0 }
  0xed   : > { %v724_v14 = vadd.f32 %v720_v11, %v718_v12  ;;  %v716_v15 = vadd.f32 %v2496_v9, %v694_v13 }
  0xee   : > { %v2607_v16 = vpop.f32.mrf.mxu0 }
  0xef   : > { %729 = vst.msk [vmem:[#allocation2 + $0x10] sm:$0xff] %vm726_vm1, %v724_v14  ;;  %v722_v18 = vadd.f32 %v720_v11, %v716_v15  ;;  %v719_v19 = vadd.f32 %v2607_v16, %v2496_v9 }
  0xf0   : > { %v697_v20 = vpop.f32.mrf.mxu0 }
  0xf1   : > { %727 = vst.msk [vmem:[#allocation2] sm:$0xff] %vm726_vm1, %v722_v18  ;;  %v725_v21 = vadd.f32 %v721_v17, %v719_v19  ;;  %v717_v22 = vadd.f32 %v2496_v9, %v697_v20 }
  0xf3   : > { %730 = vst.msk [vmem:[#allocation2 + $0x18] sm:$0xff] %vm726_vm1, %v725_v21  ;;  %v723_v23 = vadd.f32 %v721_v17, %v717_v22 }
  0xf5   : > { %728 = vst.msk [vmem:[#allocation2 + $0x8] sm:$0xff] %vm726_vm1, %v723_v23 }
  0xf6 PF: > { %v2819_v24 = vld [vmem:[%s3067_s25 + $0x8] sm:$0xff]   ;;  %v2820_v25 = vld [vmem:[%s3067_s25] sm:$0xff]   ;;  %vm760_vm2 = vcmask 261120   ;;  %v733_v28 = vld [vmem:[#allocation2 + $0x10] sm:$0xff]  ;;  %s3599_s14 = scalar_lea.vmem %s3578_s5, %s3057_s18  ;;  %s2945_s25 = smov 120   ;;  %v2947_v47 = vmov 0.0  }
  0xf7   : > { %2608 = vmatprep.subr.bf16.mxu1 %v2819_v24  ;;  %v2497_v32 = vld [vmem:[%s3599_s14] ss:$0 sm:$0xff]  ;;  %s2946_s15 = smov 112   ;;  %2622 = vmatprep.subr.bf16.mxu0 %v2947_v47  ;;  %vm2948_vm3 = vmmov 0   ;;  %s2949_s17 = smov 104   ;;  %vm893_vm4 = vcmask 64512  }
  0xf8   : > { %v731_v26 = vld [vmem:[#allocation2] sm:$0xff]  ;;  %2609 = vmatpush3.bf16.msra.mxu1 %v2819_v24  ;;  %2624 = vmatprep.mubr.msk.bf16.mxu0 %vm2948_vm3, %v2947_v47  ;;  %s2950_s19 = smov 96   ;;  %vm1291_vm5 = vcmask 130048   ;;  %s2954_s4 = smov 16   ;;  %vm2006_vm6 = vcmask 195584   ;;  %vm2148_vm11 = vcmask 523264  }
  0xf9   : > { %2610 = vmatprep.subr.bf16.mxu1 %v2820_v25  ;;  %s2955_s13 = smov 24   ;;  %p2530_p6 = scmp.ne.s32.totalorder %s2935_s29, 1 }
  0xfa   : > { %v734_v30 = vld [vmem:[#allocation2 + $0x18] sm:$0xff]  ;;  %s3600_s27 = sld [smem:[#allocation11_spill]] (!%p2530_p6) }
  0xfb   : > { %v736_v31 = vpack.c.bf16 %v734_v30, %v733_v28 }
  0xfc   : > { %v732_v27 = vld [vmem:[#allocation2 + $0x8] sm:$0xff]  ;;  %2611 = vmatpush3.bf16.msra.mxu1 %v2820_v25 }
  0xfd   : > { %v735_v29 = vpack.c.bf16 %v732_v27, %v731_v26  ;;  %2616 = vmatprep.subr.bf16.mxu1 %v2947_v47 }
  0xff   : > { %2612 = vmatprep.mubr.msk.bf16.mxu1 %vm760_vm2, %v735_v29 }
 0x100   : > { %2613 = vmatmul.mubr.msk.bf16.vlgmr.msra.gmra.mxu1 %vm760_vm2, %v736_v31 }
 0x101   : > { %2618 = vmatprep.mubr.msk.bf16.mxu1 %vm2948_vm3, %v2947_v47 }
 0x1c0   : > { %v2614_v33 = vpop.f32.mrf.mxu1 }
 0x1c1   : > { %v810_v34 = vadd.f32 %v2614_v33, %v2497_v32 }
 0x1c2   : > { %v801_v35 = vpop.f32.mrf.mxu1 }
 0x1c3   : > { %v802_v36 = vadd.f32 %v2497_v32, %v801_v35  ;;  %824 = vrot.lane.b32.xlu1 %v810_v34, %s2945_s25  ;;  %v3138_v41 = vmul.f32 0.35355338, %v810_v34 }
 0x1c4   : > { %v2615_v37 = vpop.f32.mrf.mxu1 }
 0x1c5   : > { %v813_v38 = vadd.f32 %v2615_v37, %v2497_v32  ;;  %820 = vrot.lane.b32.xlu0 %v802_v36, %s2945_s25  ;;  %v3142_v43 = vmul.f32 0.35355338, %v802_v36 }
 0x1c6   : > { %v804_v39 = vpop.f32.mrf.mxu1 }
 0x1c7   : > { %v805_v40 = vadd.f32 %v2497_v32, %v804_v39  ;;  %826 = vrot.lane.b32.xlu1 %v813_v38, %s2945_s25  ;;  %v3140_v42 = vmul.f32 0.35355338, %v813_v38  ;;  %v3156_v48 = vpack.c.bf16 %v813_v38, %v810_v34  ;;  %v3244_v39 = vld [vmem:[%s3077_s30] sm:$0xff] }
 0x1c9   : > { %v3144_v44 = vmul.f32 0.35355338, %v805_v40  ;;  %822 = vrot.lane.b32.xlu0 %v805_v40, %s2945_s25  ;;  %v873_v45 = vpack.c.bf16 %v3140_v42, %v3138_v41  ;;  %v3160_v49 = vpack.c.bf16 %v805_v40, %v802_v36 }
 0x1cb   : > { %834 = vrot.lane.b32.xlu1 %v805_v40, %s2946_s15  ;;  %v872_v46 = vpack.c.bf16 %v3144_v44, %v3142_v43 }
 0x1cd   : > { %832 = vrot.lane.b32.xlu0 %v802_v36, %s2946_s15 }
 0x1cf   : > { %838 = vrot.lane.b32.xlu1 %v813_v38, %s2946_s15 }
 0x1d1   : > { %836 = vrot.lane.b32.xlu0 %v810_v34, %s2946_s15 }
 0x1d3   : > { %846 = vrot.lane.b32.xlu1 %v805_v40, %s2949_s17 }
 0x1d5   : > { %844 = vrot.lane.b32.xlu0 %v802_v36, %s2949_s17 }
 0x1d7   : > { %850 = vrot.lane.b32.xlu1 %v813_v38, %s2949_s17 }
 0x1d9   : > { %848 = vrot.lane.b32.xlu0 %v810_v34, %s2949_s17 }
 0x1db   : > { %942 = vrot.lane.b32.xlu1 %v3156_v48, %s2950_s19 }
 0x1dd   : > { %891 = vrot.lane.b32.xlu0 %v3160_v49, %s2950_s19 }
 0x235   : > { %v825_v50 = vpop.permute.xlu1 %824 }
 0x236   : > { %v862_v53 = vmul.f32 0.35355338, %v825_v50 }
 0x237   : > { %v821_v51 = vpop.permute.xlu0 %820 }
 0x238   : > { %v3166_v57 = vmul.f32 0.35355338, %v821_v51 }
 0x239   : > { %v827_v52 = vpop.permute.xlu1 %826 }
 0x23a   : > { %v863_v54 = vmul.f32 0.35355338, %v827_v52  ;;  %v3164_v55 = vpack.c.bf16 %v827_v52, %v825_v50  ;;  %v3255_v50 = vld [vmem:[%s3077_s30 + $0x8] sm:$0xff]  ;;  %s2952_s30 = smov 64  }
 0x23b   : > { %v823_v56 = vpop.permute.xlu0 %822 }
 0x23c   : > { %v875_v58 = vpack.c.bf16 %v863_v54, %v862_v53  ;;  %v861_v59 = vmul.f32 0.35355338, %v823_v56  ;;  %v3168_v60 = vpack.c.bf16 %v823_v56, %v821_v51  ;;  %1042 = vrot.lane.b32.xlu1 %v3164_v55, %s2950_s19 }
 0x23d   : > { %v835_v61 = vpop.permute.xlu1 %834 }
 0x23e   : > { %v874_v62 = vpack.c.bf16 %v861_v59, %v3166_v57  ;;  %992 = vrot.lane.b32.xlu0 %v3168_v60, %s2950_s19  ;;  %v3175_v0 = vmul.f32 0.35355338, %v835_v61 }
 0x23f   : > { %v833_v63 = vpop.permute.xlu0 %832 }
 0x240   : > { %v3177_v1 = vmul.f32 0.35355338, %v833_v63  ;;  %v3179_v2 = vpack.c.bf16 %v835_v61, %v833_v63 }
 0x241   : > { %v839_v3 = vpop.permute.xlu1 %838 }
 0x242   : > { %v876_v4 = vpack.c.bf16 %v3175_v0, %v3177_v1  ;;  %1092 = vrot.lane.b32.xlu0 %v3179_v2, %s2950_s19  ;;  %v867_v6 = vmul.f32 0.35355338, %v839_v3 }
 0x243   : > { %v837_v5 = vpop.permute.xlu0 %836 }
 0x244   : > { %v866_v7 = vmul.f32 0.35355338, %v837_v5  ;;  %v3185_v8 = vpack.c.bf16 %v839_v3, %v837_v5 }
 0x245   : > { %v847_v9 = vpop.permute.xlu1 %846 }
 0x246   : > { %v877_v10 = vpack.c.bf16 %v867_v6, %v866_v7  ;;  %1142 = vrot.lane.b32.xlu1 %v3185_v8, %s2950_s19  ;;  %v869_v12 = vmul.f32 0.35355338, %v847_v9 }
 0x247   : > { %v845_v11 = vpop.permute.xlu0 %844 }
 0x248   : > { %v868_v13 = vmul.f32 0.35355338, %v845_v11  ;;  %v3189_v14 = vpack.c.bf16 %v847_v9, %v845_v11 }
 0x249   : > { %v851_v15 = vpop.permute.xlu1 %850 }
 0x24a   : > { %v878_v16 = vpack.c.bf16 %v869_v12, %v868_v13  ;;  %1192 = vrot.lane.b32.xlu0 %v3189_v14, %s2950_s19  ;;  %v871_v18 = vmul.f32 0.35355338, %v851_v15 }
 0x24b   : > { %v849_v17 = vpop.permute.xlu0 %848 }
 0x24c   : > { %v870_v19 = vmul.f32 0.35355338, %v849_v17  ;;  %v3193_v20 = vpack.c.bf16 %v851_v15, %v849_v17 }
 0x24d   : > { %v943_v21 = vpop.permute.xlu1 %942 }
 0x24e   : > { %v879_v22 = vpack.c.bf16 %v871_v18, %v870_v19  ;;  %1242 = vrot.lane.b32.xlu1 %v3193_v20, %s2950_s19  ;;  %v948_v23 = vsel %vm893_vm4, %v943_v21, 0 }
 0x24f   : > { %2623 = vmatpush3.bf16.xpose.msra.mxu0 %v948_v23  ;;  %v892_v24 = vpop.permute.xlu0 %891 }
 0x250   : > { %v898_v25 = vsel %vm893_vm4, %v892_v24, 0  ;;  %2634 = vmatprep.subr.bf16.mxu0 %v2947_v47 }
 0x251   : > { %2617 = vmatpush3.bf16.xpose.msra.mxu1 %v898_v25 }
 0x252   : > { %2628 = vmatprep.subr.bf16.mxu1 %v2947_v47 }
 0x256   : > { %2625 = vmatmul.mubr.msk.bf16.vlgmr.msra.gmra.mxu0 %vm893_vm4, %v873_v45 }
 0x257   : > { %2636 = vmatprep.mubr.msk.bf16.mxu0 %vm2948_vm3, %v2947_v47 }
 0x258   : > { %2619 = vmatmul.mubr.msk.bf16.vlgmr.msra.gmra.mxu1 %vm893_vm4, %v872_v46 }
 0x259   : > { %2630 = vmatprep.mubr.msk.bf16.mxu1 %vm2948_vm3, %v2947_v47 }
 0x2ae   : > { %v1043_v26 = vpop.permute.xlu1 %1042 }
 0x2af   : > { %v1048_v27 = vsel %vm893_vm4, %v1043_v26, 0 }
 0x2b0   : > { %2635 = vmatpush3.bf16.xpose.msra.mxu0 %v1048_v27  ;;  %v993_v28 = vpop.permute.xlu0 %992 }
 0x2b1   : > { %v998_v29 = vsel %vm893_vm4, %v993_v28, 0  ;;  %2646 = vmatprep.subr.bf16.mxu0 %v2947_v47 }
 0x2b2   : > { %2629 = vmatpush3.bf16.xpose.msra.mxu1 %v998_v29 }
 0x2b3   : > { %2640 = vmatprep.subr.bf16.mxu1 %v2947_v47 }
 0x2b4   : > { %v1093_v30 = vpop.permute.xlu0 %1092 }
 0x2b5   : > { %v1098_v32 = vsel %vm893_vm4, %v1093_v30, 0 }
 0x2b7   : > { %2637 = vmatmul.mubr.msk.bf16.vlgmr.msra.gmra.mxu0 %vm893_vm4, %v875_v58 }
 0x2b8   : > { %v1143_v31 = vpop.permute.xlu1 %1142  ;;  %2648 = vmatprep.mubr.msk.bf16.mxu0 %vm2948_vm3, %v2947_v47 }
 0x2b9   : > { %v1148_v33 = vsel %vm893_vm4, %v1143_v31, 0  ;;  %2631 = vmatmul.mubr.msk.bf16.vlgmr.msra.gmra.mxu1 %vm893_vm4, %v874_v62 }
 0x2ba   : > { %2641 = vmatpush3.bf16.xpose.msra.mxu1 %v1098_v32  ;;  %2647 = vmatpush3.bf16.xpose.msra.mxu0 %v1148_v33 }
 0x2bb   : > { %2642 = vmatprep.mubr.msk.bf16.mxu1 %vm2948_vm3, %v2947_v47  ;;  %2652 = vmatprep.subr.bf16.mxu1 %v2947_v47 }
 0x2bc   : > { %2658 = vmatprep.subr.bf16.mxu0 %v2947_v47  ;;  %v1193_v34 = vpop.permute.xlu0 %1192 }
 0x2bd   : > { %v1198_v36 = vsel %vm893_vm4, %v1193_v34, 0 }
 0x2c0   : > { %v1243_v35 = vpop.permute.xlu1 %1242 }
 0x2c1   : > { %v1248_v37 = vsel %vm893_vm4, %v1243_v35, 0  ;;  %2643 = vmatmul.mubr.msk.bf16.vlgmr.msra.gmra.mxu1 %vm893_vm4, %v876_v4  ;;  %2649 = vmatmul.mubr.msk.bf16.vlgmr.msra.gmra.mxu0 %vm893_vm4, %v877_v10 }
 0x2c2   : > { %2653 = vmatpush3.bf16.xpose.msra.mxu1 %v1198_v36  ;;  %2659 = vmatpush3.bf16.xpose.msra.mxu0 %v1248_v37 }
 0x2c3   : > { %2654 = vmatprep.mubr.msk.bf16.mxu1 %vm2948_vm3, %v2947_v47  ;;  %2660 = vmatprep.mubr.msk.bf16.mxu0 %vm2948_vm3, %v2947_v47 }
 0x2c4   : > { %2664 = vmatprep.subr.bf16.mxu1 %v2947_v47  ;;  %2670 = vmatprep.subr.bf16.mxu0 %v2947_v47 }
 0x2c9   : > { %2655 = vmatmul.mubr.msk.bf16.vlgmr.msra.gmra.mxu1 %vm893_vm4, %v878_v16  ;;  %2661 = vmatmul.mubr.msk.bf16.vlgmr.msra.gmra.mxu0 %vm893_vm4, %v879_v22 }
 0x2ca   : > { %2666 = vmatprep.mubr.msk.bf16.mxu1 %vm2948_vm3, %v2947_v47  ;;  %2672 = vmatprep.mubr.msk.bf16.mxu0 %vm2948_vm3, %v2947_v47 }
 0x316   : > { %v984_v38 = vpop.f32.mrf.mxu0 }
 0x317   : > { %v3250_v45 = vadd.f32 %v984_v38, %v3244_v39 }
 0x318   : > { %v934_v40 = vpop.f32.mrf.mxu1  ;;  %v2626_v41 = vpop.f32.mrf.mxu0 }
 0x319   : > { %v3247_v42 = vadd.f32 %v934_v40, %v3244_v39  ;;  %v1298_v57 = vsel %vm1291_vm5, %v3250_v45, -inf }
 0x31a   : > { %v2620_v43 = vpop.f32.mrf.mxu1  ;;  %v987_v44 = vpop.f32.mrf.mxu0 }
 0x31b   : > { %v1292_v46 = vsel %vm1291_vm5, %v3247_v42, -inf  ;;  %v3261_v56 = vadd.f32 %v987_v44, %v3255_v50 }
 0x31c   : > { %v2627_v51 = vpop.f32.mrf.mxu0  ;;  %1293 = vmax.xlane.f32.xlu0 %v1292_v46  ;;  %v937_v52 = vpop.f32.mrf.mxu1 }
 0x31d   : > { %v3258_v53 = vadd.f32 %v937_v52, %v3255_v50  ;;  %v1301_v59 = vsel %vm1291_vm5, %v3261_v56, -inf }
 0x31e   : > { %v2621_v54 = vpop.f32.mrf.mxu1 }
 0x31f   : > { %v1295_v58 = vsel %vm1291_vm5, %v3258_v53, -inf }
 0x320   : > { %1299 = vmax.xlane.f32.xlu0 %v1298_v57  ;;  %1296 = vmax.xlane.f32.xlu1 %v1295_v58 }
 0x324   : > { %1302 = vmax.xlane.f32.xlu0 %v1301_v59 }
 0x377   : > { %v1084_v61 = vpop.f32.mrf.mxu0 }
 0x378   : > { %v3273_v4 = vadd.f32 %v1084_v61, %v3244_v39 }
 0x379   : > { %v1034_v62 = vpop.f32.mrf.mxu1  ;;  %v2638_v63 = vpop.f32.mrf.mxu0 }
 0x37a   : > { %v3270_v0 = vadd.f32 %v1034_v62, %v3244_v39  ;;  %v1310_v12 = vsel %vm1291_vm5, %v3273_v4, -inf }
 0x37b   : > { %v2632_v1 = vpop.f32.mrf.mxu1  ;;  %v1087_v3 = vpop.f32.mrf.mxu0 }
 0x37c   : > { %v1304_v5 = vsel %vm1291_vm5, %v3270_v0, -inf  ;;  %v3281_v11 = vadd.f32 %v1087_v3, %v3255_v50 }
 0x37d   : > { %v2639_v6 = vpop.f32.mrf.mxu0  ;;  %1305 = vmax.xlane.f32.xlu1 %v1304_v5  ;;  %v1037_v7 = vpop.f32.mrf.mxu1 }
 0x37e   : > { %v3278_v9 = vadd.f32 %v1037_v7, %v3255_v50  ;;  %v1313_v22 = vsel %vm1291_vm5, %v3281_v11, -inf }
 0x37f   : > { %v2633_v10 = vpop.f32.mrf.mxu1 }
 0x380   : > { %v1307_v13 = vsel %vm1291_vm5, %v3278_v9, -inf }
 0x381   : > { %v1184_v15 = vpop.f32.mrf.mxu0  ;;  %1311 = vmax.xlane.f32.xlu1 %v1310_v12  ;;  %1308 = vmax.xlane.f32.xlu0 %v1307_v13  ;;  %v1134_v16 = vpop.f32.mrf.mxu1 }
 0x382   : > { %v3288_v17 = vadd.f32 %v1134_v16, %v3244_v39  ;;  %v3291_v21 = vadd.f32 %v1184_v15, %v3244_v39 }
 0x383   : > { %v2644_v18 = vpop.f32.mrf.mxu1  ;;  %v2650_v19 = vpop.f32.mrf.mxu0 }
 0x384   : > { %v1316_v23 = vsel %vm1291_vm5, %v3288_v17, -inf  ;;  %v1322_v30 = vsel %vm1291_vm5, %v3291_v21, -inf  ;;  %v2951_v18 = vmov 0  }
 0x385   : > { %v1187_v24 = vpop.f32.mrf.mxu0  ;;  %1314 = vmax.xlane.f32.xlu0 %v1313_v22  ;;  %1317 = vmax.xlane.f32.xlu1 %v1316_v23  ;;  %v1137_v25 = vpop.f32.mrf.mxu1 }
 0x386   : > { %v3298_v26 = vadd.f32 %v1137_v25, %v3255_v50  ;;  %v3301_v29 = vadd.f32 %v1187_v24, %v3255_v50  ;;  %2788 = vset.pattern.permute.xlu0 %v2951_v18  ;;  %2787 = vset.pattern.permute.xlu1 %v2951_v18 }
 0x387   : > { %v2645_v27 = vpop.f32.mrf.mxu1  ;;  %v2651_v28 = vpop.f32.mrf.mxu0 }
 0x388   : > { %v1319_v31 = vsel %vm1291_vm5, %v3298_v26, -inf  ;;  %v1325_v38 = vsel %vm1291_vm5, %v3301_v29, -inf }
 0x389   : > { %v1284_v32 = vpop.f32.mrf.mxu0  ;;  %1323 = vmax.xlane.f32.xlu1 %v1322_v30  ;;  %1320 = vmax.xlane.f32.xlu0 %v1319_v31  ;;  %v1234_v33 = vpop.f32.mrf.mxu1 }
 0x38a   : > { %v3308_v34 = vadd.f32 %v1234_v33, %v3244_v39  ;;  %v3311_v37 = vadd.f32 %v1284_v32, %v3244_v39 }
 0x38b   : > { %v2656_v35 = vpop.f32.mrf.mxu1  ;;  %v2662_v36 = vpop.f32.mrf.mxu0 }
 0x38c   : > { %v1328_v40 = vsel %vm1291_vm5, %v3308_v34, -inf  ;;  %v1334_v39 = vsel %vm1291_vm5, %v3311_v37, -inf }
 0x38d   : > { %v1287_v41 = vpop.f32.mrf.mxu0  ;;  %1326 = vmax.xlane.f32.xlu0 %v1325_v38  ;;  %1329 = vmax.xlane.f32.xlu1 %v1328_v40  ;;  %v1237_v43 = vpop.f32.mrf.mxu1 }
 0x38e   : > { %v3318_v44 = vadd.f32 %v1237_v43, %v3255_v50  ;;  %v3321_v52 = vadd.f32 %v1287_v41, %v3255_v50 }
 0x38f   : > { %v2657_v46 = vpop.f32.mrf.mxu1  ;;  %v2663_v51 = vpop.f32.mrf.mxu0 }
 0x390   : > { %v1331_v54 = vsel %vm1291_vm5, %v3318_v44, -inf  ;;  %v1337_v57 = vsel %vm1291_vm5, %v3321_v52, -inf }
 0x391   : > { %1335 = vmax.xlane.f32.xlu1 %v1334_v39  ;;  %1332 = vmax.xlane.f32.xlu0 %v1331_v54 }
 0x395   : > { %1338 = vmax.xlane.f32.xlu0 %v1337_v57 }
 0x3a5   : > { %v1294_v58 = vpop.xlane.xlu0 %1293 }
 0x3a6   : > { %v1340_v59 = vsub.f32 %v3247_v42, %v1294_v58 }
 0x3a8   : > { %v1356_v1 = vmul.f32 1.442695, %v1340_v59 }
 0x3a9   : > { %v1300_v61 = vpop.xlane.xlu0 %1299  ;;  %v1297_v62 = vpop.xlane.xlu1 %1296 }
 0x3aa   : > { %v1342_v50 = vsub.f32 %v3250_v45, %v1300_v61  ;;  %v1341_v63 = vsub.f32 %v3258_v53, %v1297_v62 }
 0x3ac   : > { %v1360_v3 = vmul.f32 1.442695, %v1342_v50  ;;  %v1358_v5 = vmul.f32 1.442695, %v1341_v63 }
 0x3ad   : > { %v1303_v6 = vpop.xlane.xlu0 %1302 }
 0x3ae   : > { %2827 = vpow2.f32 %v1360_v3  ;;  %v1343_v7 = vsub.f32 %v3261_v56, %v1303_v6 }
 0x3af   : > { %2829 = vpow2.f32 %v1358_v5 }
 0x3b0   : > { %2831 = vpow2.f32 %v1356_v1  ;;  %v1362_v10 = vmul.f32 1.442695, %v1343_v7 }
 0x3b2   : > { %2833 = vpow2.f32 %v1362_v10 }
 0x3bb   : > { %v3333_v12 = vpop.eup %2827 }
 0x3bc   : > { %v3335_v42 = vpop.eup %2829  ;;  %v1394_v45 = vsel %vm1291_vm5, %v3333_v12, 0.0 }
 0x3bd   : > { %v3339_v13 = vpop.eup %2831  ;;  %1395 = vadd.xlane.f32.xlu1 %v1394_v45  ;;  %v1391_v53 = vsel %vm1291_vm5, %v3335_v42, 0.0 }
 0x3be   : > { %1392 = vadd.xlane.f32.xlu0 %v1391_v53  ;;  %v1388_v56 = vsel %vm1291_vm5, %v3339_v13, 0.0 }
 0x3bf   : > { %v3343_v15 = vpop.eup %2833 }
 0x3c0   : > { %v1397_v16 = vsel %vm1291_vm5, %v3343_v15, 0.0 }
 0x3c1   : > { %1389 = vadd.xlane.f32.xlu1 %v1388_v56 }
 0x3c2   : > { %1398 = vadd.xlane.f32.xlu0 %v1397_v16 }
 0x406   : > { %v1306_v19 = vpop.xlane.xlu1 %1305 }
 0x407   : > { %v1344_v22 = vsub.f32 %v3270_v0, %v1306_v19 }
 0x409   : > { %v1364_v28 = vmul.f32 1.442695, %v1344_v22 }
 0x40a   : > { %v1312_v23 = vpop.xlane.xlu1 %1311  ;;  %v1309_v24 = vpop.xlane.xlu0 %1308 }
 0x40b   : > { %v1346_v25 = vsub.f32 %v3273_v4, %v1312_v23  ;;  %v1345_v27 = vsub.f32 %v3278_v9, %v1309_v24 }
 0x40d   : > { %v1368_v30 = vmul.f32 1.442695, %v1346_v25  ;;  %v1366_v31 = vmul.f32 1.442695, %v1345_v27 }
 0x40e   : > { %v1315_v32 = vpop.xlane.xlu0 %1314  ;;  %v1318_v33 = vpop.xlane.xlu1 %1317 }
 0x40f   : > { %2835 = vpow2.f32 %v1368_v30  ;;  %v1347_v35 = vsub.f32 %v3281_v11, %v1315_v32  ;;  %v1348_v38 = vsub.f32 %v3288_v17, %v1318_v33 }
 0x410   : > { %2837 = vpow2.f32 %v1366_v31 }
 0x411   : > { %2839 = vpow2.f32 %v1364_v28  ;;  %v1370_v36 = vmul.f32 1.442695, %v1347_v35  ;;  %v1372_v41 = vmul.f32 1.442695, %v1348_v38  ;;  %v3414_v38 = vld [vmem:[%s3072_s28] sm:$0xff] }
 0x412   : > { %v1324_v0 = vpop.xlane.xlu1 %1323  ;;  %v1321_v40 = vpop.xlane.xlu0 %1320 }
 0x413   : > { %2841 = vpow2.f32 %v1370_v36  ;;  %v1350_v4 = vsub.f32 %v3291_v21, %v1324_v0  ;;  %v1349_v9 = vsub.f32 %v3298_v26, %v1321_v40  ;;  %v3417_v0 = vld [vmem:[%s3072_s28 + $0x8] sm:$0xff]  ;;  %s2953_s28 = smov 8  }
 0x415   : > { %v1376_v43 = vmul.f32 1.442695, %v1350_v4  ;;  %v1374_v46 = vmul.f32 1.442695, %v1349_v9 }
 0x416   : > { %v1327_v51 = vpop.xlane.xlu0 %1326  ;;  %v1330_v39 = vpop.xlane.xlu1 %1329 }
 0x417   : > { %2843 = vpow2.f32 %v1376_v43  ;;  %v1351_v11 = vsub.f32 %v3301_v29, %v1327_v51  ;;  %v1352_v54 = vsub.f32 %v3308_v34, %v1330_v39 }
 0x418   : > { %2845 = vpow2.f32 %v1374_v46 }
 0x419   : > { %2847 = vpow2.f32 %v1372_v41  ;;  %v1378_v17 = vmul.f32 1.442695, %v1351_v11  ;;  %v1380_v61 = vmul.f32 1.442695, %v1352_v54 }
 0x41a   : > { %v1336_v57 = vpop.xlane.xlu1 %1335  ;;  %v1333_v58 = vpop.xlane.xlu0 %1332 }
 0x41b   : > { %2849 = vpow2.f32 %v1378_v17  ;;  %v1354_v21 = vsub.f32 %v3311_v37, %v1336_v57  ;;  %v1353_v26 = vsub.f32 %v3318_v44, %v1333_v58 }
 0x41c   : > { %v3360_v59 = vpop.eup %2835 }
 0x41d   : > { %v3362_v62 = vpop.eup %2837  ;;  %v1384_v50 = vmul.f32 1.442695, %v1354_v21  ;;  %v1382_v63 = vmul.f32 1.442695, %v1353_v26  ;;  %v1406_v29 = vsel %vm1291_vm5, %v3360_v59, 0.0 }
 0x41e   : > { %v3366_v34 = vpop.eup %2839  ;;  %1407 = vadd.xlane.f32.xlu1 %v1406_v29  ;;  %v1403_v1 = vsel %vm1291_vm5, %v3362_v62, 0.0  ;;  %v1339_v3 = vpop.xlane.xlu0 %1338 }
 0x41f   : > { %2851 = vpow2.f32 %v1384_v50  ;;  %1404 = vadd.xlane.f32.xlu0 %v1403_v1  ;;  %v1355_v37 = vsub.f32 %v3321_v52, %v1339_v3  ;;  %v1400_v6 = vsel %vm1291_vm5, %v3366_v34, 0.0 }
 0x420   : > { %v3371_v44 = vpop.eup %2841  ;;  %2853 = vpow2.f32 %v1382_v63 }
 0x421   : > { %2855 = vpow2.f32 %v1380_v61  ;;  %v1386_v5 = vmul.f32 1.442695, %v1355_v37  ;;  %v1409_v7 = vsel %vm1291_vm5, %v3371_v44, 0.0 }
 0x422   : > { %1401 = vadd.xlane.f32.xlu1 %v1400_v6 }
 0x423   : > { %2857 = vpow2.f32 %v1386_v5  ;;  %1410 = vadd.xlane.f32.xlu0 %v1409_v7 }
 0x424   : > { %v3377_v10 = vpop.eup %2843 }
 0x425   : > { %v3379_v45 = vpop.eup %2845  ;;  %v1418_v52 = vsel %vm1291_vm5, %v3377_v10, 0.0 }
 0x426   : > { %v3383_v53 = vpop.eup %2847  ;;  %1419 = vadd.xlane.f32.xlu1 %v1418_v52  ;;  %v1415_v56 = vsel %vm1291_vm5, %v3379_v45, 0.0 }
 0x427   : > { %1416 = vadd.xlane.f32.xlu0 %v1415_v56  ;;  %v1412_v18 = vsel %vm1291_vm5, %v3383_v53, 0.0 }
 0x428   : > { %v3387_v16 = vpop.eup %2849 }
 0x429   : > { %v1421_v19 = vsel %vm1291_vm5, %v3387_v16, 0.0 }
 0x42a   : > { %1413 = vadd.xlane.f32.xlu1 %v1412_v18 }
 0x42b   : > { %1422 = vadd.xlane.f32.xlu0 %v1421_v19 }
 0x42c   : > { %v3393_v22 = vpop.eup %2851 }
 0x42d   : > { %v3395_v23 = vpop.eup %2853  ;;  %v1430_v24 = vsel %vm1291_vm5, %v3393_v22, 0.0 }
 0x42e   : > { %v3399_v25 = vpop.eup %2855  ;;  %1431 = vadd.xlane.f32.xlu1 %v1430_v24  ;;  %v1427_v27 = vsel %vm1291_vm5, %v3395_v23, 0.0 }
 0x42f   : > { %1428 = vadd.xlane.f32.xlu0 %v1427_v27  ;;  %v1424_v30 = vsel %vm1291_vm5, %v3399_v25, 0.0 }
 0x430   : > { %v3403_v28 = vpop.eup %2857 }
 0x431   : > { %v1433_v31 = vsel %vm1291_vm5, %v3403_v28, 0.0 }
 0x432   : > { %1425 = vadd.xlane.f32.xlu1 %v1424_v30 }
 0x433   : > { %1434 = vadd.xlane.f32.xlu0 %v1433_v31 }
 0x443   : > { %1574 = vrot.lane.b32.xlu1 %v3160_v49, %s2952_s30 }
 0x446   : > { %v1396_v32 = vpop.xlane.xlu1 %1395 }
 0x447   : > { %2859 = vrcp.f32 %v1396_v32  ;;  %v1393_v33 = vpop.xlane.xlu0 %1392  ;;  %1621 = vrot.lane.b32.xlu1 %v3156_v48, %s2952_s30 }
 0x448   : > { %2861 = vrcp.f32 %v1393_v33 }
 0x44a   : > { %v1390_v35 = vpop.xlane.xlu1 %1389 }
 0x44b   : > { %2863 = vrcp.f32 %v1390_v35  ;;  %v1399_v36 = vpop.xlane.xlu0 %1398 }
 0x44c   : > { %2865 = vrcp.f32 %v1399_v36 }
 0x454   : > { %v2860_v40 = vpop.eup %2859 }
 0x455   : > { %v2862_v4 = vpop.eup %2861  ;;  %v1456_v9 = vmul.f32 %v2860_v40, %v3414_v38 }
 0x456   : > { %v1455_v49 = vmul.f32 %v2862_v4, %v3417_v0 }
 0x457   : > { %1482 = vperm.xlu1 %2787, %v1456_v9  }
 0x458   : > { %v2864_v41 = vpop.eup %2863  ;;  %1477 = vperm.xlu0 %2788, %v1455_v49  }
 0x459   : > { %v1454_v48 = vmul.f32 %v2864_v41, %v3414_v38  ;;  %v2866_v43 = vpop.eup %2865 }
 0x45a   : > { %v1457_v46 = vmul.f32 %v2866_v43, %v3417_v0 }
 0x45b   : > { %1472 = vperm.xlu1 %2787, %v1454_v48  }
 0x45c   : > { %1668 = vrot.lane.b32.xlu0 %v3168_v60, %s2952_s30 }
 0x45f   : > { %1487 = vperm.xlu1 %2787, %v1457_v46  }
 0x460   : > { %1762 = vrot.lane.b32.xlu0 %v3179_v2, %s2952_s30 }
 0x463   : > { %1715 = vrot.lane.b32.xlu1 %v3164_v55, %s2952_s30 }
 0x4a7   : > { %v1408_v51 = vpop.xlane.xlu1 %1407 }
 0x4a8   : > { %2867 = vrcp.f32 %v1408_v51  ;;  %v1405_v39 = vpop.xlane.xlu0 %1404 }
 0x4ab   : > { %v1402_v11 = vpop.xlane.xlu1 %1401 }
 0x4ac   : > { %2869 = vrcp.f32 %v1402_v11  ;;  %v1411_v54 = vpop.xlane.xlu0 %1410 }
 0x4ad   : > { %2871 = vrcp.f32 %v1411_v54 }
 0x4af   : > { %v1420_v17 = vpop.xlane.xlu1 %1419 }
 0x4b0   : > { %2873 = vrcp.f32 %v1420_v17  ;;  %v1417_v57 = vpop.xlane.xlu0 %1416 }
 0x4b1   : > { %2875 = vrcp.f32 %v1405_v39 }
 0x4b3   : > { %v1414_v60 = vpop.xlane.xlu1 %1413 }
 0x4b4   : > { %2877 = vrcp.f32 %v1414_v60  ;;  %v1423_v58 = vpop.xlane.xlu0 %1422 }
 0x4b5   : > { %v2868_v21 = vpop.eup %2867  ;;  %2879 = vrcp.f32 %v1423_v58 }
 0x4b6   : > { %v1460_v2 = vmul.f32 %v2868_v21, %v3414_v38 }
 0x4b7   : > { %v1432_v26 = vpop.xlane.xlu1 %1431 }
 0x4b8   : > { %2881 = vrcp.f32 %v1432_v26  ;;  %1502 = vperm.xlu1 %2787, %v1460_v2   ;;  %v1429_v1 = vpop.xlane.xlu0 %1428 }
 0x4b9   : > { %v2870_v55 = vpop.eup %2869  ;;  %2883 = vrcp.f32 %v1417_v57 }
 0x4ba   : > { %v1458_v61 = vmul.f32 %v2870_v55, %v3414_v38  ;;  %v2872_v63 = vpop.eup %2871 }
 0x4bb   : > { %v1426_v50 = vpop.xlane.xlu1 %1425  ;;  %v1461_v5 = vmul.f32 %v2872_v63, %v3417_v0 }
 0x4bc   : > { %2885 = vrcp.f32 %v1426_v50  ;;  %1492 = vperm.xlu1 %2787, %v1458_v61   ;;  %v1435_v24 = vpop.xlane.xlu0 %1434 }
 0x4bd   : > { %v2874_v29 = vpop.eup %2873  ;;  %2887 = vrcp.f32 %v1429_v1 }
 0x4be   : > { %v1464_v3 = vmul.f32 %v2874_v29, %v3414_v38  ;;  %v2876_v6 = vpop.eup %2875  ;;  %2889 = vrcp.f32 %v1435_v24 }
 0x4bf   : > { %v1575_v37 = vpop.permute.xlu1 %1574  ;;  %v1459_v18 = vmul.f32 %v2876_v6, %v3417_v0 }
 0x4c0   : > { %2665 = vmatpush3.bf16.msra.mxu1 %v1575_v37  ;;  %1522 = vperm.xlu0 %2788, %v1464_v3  }
 0x4c1   : > { %v2878_v7 = vpop.eup %2877  ;;  %1507 = vperm.xlu1 %2787, %v1461_v5   ;;  %2676 = vmatprep.subr.bf16.mxu1 %v2947_v47 }
 0x4c2   : > { %v1462_v52 = vmul.f32 %v2878_v7, %v3414_v38  ;;  %v2880_v19 = vpop.eup %2879 }
 0x4c3   : > { %v1622_v56 = vpop.permute.xlu1 %1621  ;;  %v1465_v31 = vmul.f32 %v2880_v19, %v3417_v0 }
 0x4c4   : > { %2671 = vmatpush3.bf16.msra.mxu0 %v1622_v56  ;;  %1512 = vperm.xlu0 %2788, %v1462_v52  }
 0x4c5   : > { %v2882_v27 = vpop.eup %2881  ;;  %1497 = vperm.xlu1 %2787, %v1459_v18   ;;  %2682 = vmatprep.subr.bf16.mxu0 %v2947_v47 }
 0x4c6   : > { %v1468_v30 = vmul.f32 %v2882_v27, %v3414_v38  ;;  %v2884_v32 = vpop.eup %2883 }
 0x4c7   : > { %v1463_v36 = vmul.f32 %v2884_v32, %v3417_v0 }
 0x4c8   : > { %1542 = vperm.xlu0 %2788, %v1468_v30  }
 0x4c9   : > { %v2886_v33 = vpop.eup %2885  ;;  %1527 = vperm.xlu1 %2787, %v1465_v31  }
 0x4ca   : > { %v1466_v35 = vmul.f32 %v2886_v33, %v3414_v38  ;;  %v2888_v40 = vpop.eup %2887 }
 0x4cb   : > { %v1467_v9 = vmul.f32 %v2888_v40, %v3417_v0  ;;  %v2890_v49 = vpop.eup %2889 }
 0x4cc   : > { %1532 = vperm.xlu0 %2788, %v1466_v35   ;;  %v1469_v46 = vmul.f32 %v2890_v49, %v3417_v0 }
 0x4cd   : > { %1517 = vperm.xlu1 %2787, %v1463_v36  }
 0x4d0   : > { %1856 = vrot.lane.b32.xlu0 %v3189_v14, %s2952_s30 }
 0x4d1   : > { %1809 = vrot.lane.b32.xlu1 %v3185_v8, %s2952_s30 }
 0x4d2   : > { %v1483_v4 = vpop.permute.xlu1 %1482 }
 0x4d3   : > { %v1478_v41 = vpop.permute.xlu0 %1477  ;;  %v1552_v14 = vmul.f32 %v3333_v12, %v1483_v4 }
 0x4d4   : > { %v1551_v38 = vmul.f32 %v3335_v42, %v1478_v41 }
 0x4d5   : > { %1537 = vperm.xlu1 %2787, %v1467_v9  }
 0x4d6   : > { %v1473_v48 = vpop.permute.xlu1 %1472 }
 0x4d7   : > { %v1550_v43 = vmul.f32 %v3339_v13, %v1473_v48  ;;  %v1669_v11 = vpop.permute.xlu0 %1668 }
 0x4d9   : > { %v1566_v51 = vpack.c.bf16 %v1551_v38, %v1550_v43  ;;  %1547 = vperm.xlu1 %2787, %v1469_v46  }
 0x4da   : > { %v1488_v39 = vpop.permute.xlu1 %1487 }
 0x4db   : > { %v1553_v8 = vmul.f32 %v3343_v15, %v1488_v39  ;;  %2667 = vmatmul.mubr.msk.bf16.vlgmr.msra.gmra.mxu1 %vm1291_vm5, %v1566_v51  ;;  %v1763_v13 = vpop.permute.xlu0 %1762  ;;  %v2821_v39 = vld [vmem:[%s3082_s20 + $0x8] sm:$0xff]  }
 0x4dc   : > { %2677 = vmatpush3.bf16.msra.mxu1 %v1669_v11  ;;  %2678 = vmatprep.mubr.msk.bf16.mxu1 %vm2948_vm3, %v2947_v47 }
 0x4dd   : > { %v1567_v54 = vpack.c.bf16 %v1553_v8, %v1552_v14  ;;  %1903 = vrot.lane.b32.xlu1 %v3193_v20, %s2952_s30  ;;  %2688 = vmatprep.subr.bf16.mxu1 %v2947_v47 }
 0x4de   : > { %v1716_v42 = vpop.permute.xlu1 %1715 }
 0x4df   : > { %2673 = vmatmul.mubr.msk.bf16.vlgmr.msra.gmra.mxu0 %vm1291_vm5, %v1567_v54 }
 0x4e0   : > { %2683 = vmatpush3.bf16.msra.mxu0 %v1716_v42  ;;  %2684 = vmatprep.mubr.msk.bf16.mxu0 %vm2948_vm3, %v2947_v47 }
 0x4e1   : > { %2694 = vmatprep.subr.bf16.mxu0 %v2947_v47 }
 0x533   : > { %v1503_v12 = vpop.permute.xlu1 %1502 }
 0x534   : > { %v1556_v57 = vmul.f32 %v3360_v59, %v1503_v12  ;;  %v2822_v12 = vld [vmem:[%s3082_s20] sm:$0xff]  }
 0x537   : > { %v1493_v15 = vpop.permute.xlu1 %1492 }
 0x538   : > { %v1554_v2 = vmul.f32 %v3366_v34, %v1493_v15 }
 0x53b   : > { %v1523_v0 = vpop.permute.xlu0 %1522 }
 0x53c   : > { %v1508_v17 = vpop.permute.xlu1 %1507  ;;  %v1560_v3 = vmul.f32 %v3377_v10, %v1523_v0 }
 0x53d   : > { %v1557_v20 = vmul.f32 %v3371_v44, %v1508_v17 }
 0x53f   : > { %v1569_v60 = vpack.c.bf16 %v1557_v20, %v1556_v57  ;;  %v1513_v58 = vpop.permute.xlu0 %1512 }
 0x540   : > { %v1498_v21 = vpop.permute.xlu1 %1497 }
 0x541   : > { %v1555_v26 = vmul.f32 %v3362_v62, %v1498_v21  ;;  %2685 = vmatmul.mubr.msk.bf16.vlgmr.msra.gmra.mxu0 %vm1291_vm5, %v1569_v60  ;;  %v1558_v62 = vmul.f32 %v3383_v53, %v1513_v58 }
 0x542   : > { %2696 = vmatprep.mubr.msk.bf16.mxu0 %vm2948_vm3, %v2947_v47 }
 0x543   : > { %v1568_v55 = vpack.c.bf16 %v1555_v26, %v1554_v2  ;;  %v1543_v61 = vpop.permute.xlu0 %1542 }
 0x544   : > { %v1528_v50 = vpop.permute.xlu1 %1527  ;;  %v1564_v52 = vmul.f32 %v3393_v22, %v1543_v61 }
 0x545   : > { %2679 = vmatmul.mubr.msk.bf16.vlgmr.msra.gmra.mxu1 %vm1291_vm5, %v1568_v55  ;;  %v1561_v63 = vmul.f32 %v3387_v16, %v1528_v50 }
 0x546   : > { %2689 = vmatpush3.bf16.msra.mxu1 %v1763_v13  ;;  %2690 = vmatprep.mubr.msk.bf16.mxu1 %vm2948_vm3, %v2947_v47 }
 0x547   : > { %v1533_v59 = vpop.permute.xlu0 %1532  ;;  %2700 = vmatprep.subr.bf16.mxu1 %v2947_v47  ;;  %v1571_v5 = vpack.c.bf16 %v1561_v63, %v1560_v3 }
 0x548   : > { %v1518_v34 = vpop.permute.xlu1 %1517 }
 0x549   : > { %v1559_v44 = vmul.f32 %v3379_v45, %v1518_v34  ;;  %v1562_v45 = vmul.f32 %v3399_v25, %v1533_v59 }
 0x54b   : > { %v1570_v29 = vpack.c.bf16 %v1559_v44, %v1558_v62  ;;  %v1857_v1 = vpop.permute.xlu0 %1856 }
 0x54c   : > { %v1810_v37 = vpop.permute.xlu1 %1809 }
 0x54d   : > { %2691 = vmatmul.mubr.msk.bf16.vlgmr.msra.gmra.mxu1 %vm1291_vm5, %v1570_v29  ;;  %2695 = vmatpush3.bf16.msra.mxu0 %v1810_v37 }
 0x54e   : > { %2701 = vmatpush3.bf16.msra.mxu1 %v1857_v1  ;;  %2702 = vmatprep.mubr.msk.bf16.mxu1 %vm2948_vm3, %v2947_v47 }
 0x54f   : > { %2706 = vmatprep.subr.bf16.mxu0 %v2947_v47  ;;  %2712 = vmatprep.subr.bf16.mxu1 %v2821_v39 }
 0x550   : > { %v1538_v53 = vpop.permute.xlu1 %1537  ;;  %2697 = vmatmul.mubr.msk.bf16.vlgmr.msra.gmra.mxu0 %vm1291_vm5, %v1571_v5 }
 0x551   : > { %v1563_v16 = vmul.f32 %v3395_v23, %v1538_v53  ;;  %2708 = vmatprep.mubr.msk.bf16.mxu0 %vm2948_vm3, %v2947_v47 }
 0x553   : > { %v1572_v10 = vpack.c.bf16 %v1563_v16, %v1562_v45 }
 0x554   : > { %v1548_v6 = vpop.permute.xlu1 %1547 }
 0x555   : > { %2703 = vmatmul.mubr.msk.bf16.vlgmr.msra.gmra.mxu1 %vm1291_vm5, %v1572_v10  ;;  %v1565_v7 = vmul.f32 %v3403_v28, %v1548_v6 }
 0x556   : > { %2713 = vmatpush3.bf16.msra.mxu1 %v2821_v39 }
 0x557   : > { %v1573_v18 = vpack.c.bf16 %v1565_v7, %v1564_v52  ;;  %2714 = vmatprep.subr.bf16.mxu1 %v2822_v12 }
 0x558   : > { %v1904_v56 = vpop.permute.xlu1 %1903 }
 0x559   : > { %2707 = vmatpush3.bf16.msra.mxu0 %v1904_v56 }
 0x55a   : > { %2715 = vmatpush3.bf16.msra.mxu1 %v2822_v12 }
 0x55c   : > { %2709 = vmatmul.mubr.msk.bf16.vlgmr.msra.gmra.mxu0 %vm1291_vm5, %v1573_v18 }
 0x59b   : > { %v3489_v19 = vpop.f32.mrf.mxu1 }
 0x59d   : > { %v2668_v25 = vpop.f32.mrf.mxu1 }
 0x59f   : > { %v1617_v23 = vpop.f32.mrf.mxu1  ;;  %v3491_v24 = vpop.f32.mrf.mxu0 }
 0x5a1   : > { %v2669_v47 = vpop.f32.mrf.mxu1  ;;  %v2674_v27 = vpop.f32.mrf.mxu0 }
 0x5a3   : > { %v3493_v30 = vpop.f32.mrf.mxu0 }
 0x5a5   : > { %v2675_v31 = vpop.f32.mrf.mxu0 }
 0x601   : > { %v1755_v32 = vpop.f32.mrf.mxu0 }
 0x603   : > { %v2686_v28 = vpop.f32.mrf.mxu0 }
 0x605   : > { %v1708_v33 = vpop.f32.mrf.mxu1  ;;  %v1758_v22 = vpop.f32.mrf.mxu0 }
 0x606   : > { %v2789_v35 = vpack.i.bf16 %v1758_v22, %v1755_v32  ;;  %v2826_v22 = vld [vmem:[%s3092_s26] sm:$0xff]  }
 0x607   : > { %v2680_v36 = vpop.f32.mrf.mxu1  ;;  %v2687_v40 = vpop.f32.mrf.mxu0 }
 0x608   : > { %2790 = vrot.lane.b32.xlu1 %v2789_v35, %s2953_s28  ;;  %v2518_v35 = vld [vmem:[%s609_s23] ss:$0 sm:$0xff] }
 0x609   : > { %v1711_v4 = vpop.f32.mrf.mxu1 }
 0x60a   : > { %v2794_v9 = vpack.i.bf16 %v1711_v4, %v1708_v33  ;;  %v2824_v33 = vld [vmem:[%s3092_s26 + $0x10] sm:$0xff]  }
 0x60b   : > { %v2681_v49 = vpop.f32.mrf.mxu1 }
 0x60c   : > { %2795 = vrot.lane.b32.xlu0 %v2794_v9, %s2953_s28 }
 0x60d   : > { %v1802_v41 = vpop.f32.mrf.mxu1 }
 0x60f   : > { %v2692_v48 = vpop.f32.mrf.mxu1 }
 0x610   : > { %v1849_v38 = vpop.f32.mrf.mxu0 }
 0x611   : > { %v1805_v43 = vpop.f32.mrf.mxu1 }
 0x612   : > { %v2804_v46 = vpack.i.bf16 %v1805_v43, %v1802_v41  ;;  %v2698_v51 = vpop.f32.mrf.mxu0 }
 0x613   : > { %v2693_v14 = vpop.f32.mrf.mxu1 }
 0x614   : > { %v1852_v11 = vpop.f32.mrf.mxu0  ;;  %2805 = vrot.lane.b32.xlu0 %v2804_v46, %s2954_s4 }
 0x615   : > { %v2799_v8 = vpack.i.bf16 %v1852_v11, %v1849_v38  ;;  %v1896_v54 = vpop.f32.mrf.mxu1 }
 0x616   : > { %v2699_v42 = vpop.f32.mrf.mxu0 }
 0x617   : > { %2800 = vrot.lane.b32.xlu1 %v2799_v8, %s2954_s4  ;;  %v2704_v13 = vpop.f32.mrf.mxu1 }
 0x619   : > { %v1899_v15 = vpop.f32.mrf.mxu1 }
 0x61a   : > { %v2809_v0 = vpack.i.bf16 %v1899_v15, %v1896_v54 }
 0x61b   : > { %v2705_v17 = vpop.f32.mrf.mxu1 }
 0x61c   : > { %v1943_v57 = vpop.f32.mrf.mxu0  ;;  %2810 = vrot.lane.b32.xlu0 %v2809_v0, %s2955_s13 }
 0x61e   : > { %v2710_v20 = vpop.f32.mrf.mxu0 }
 0x620   : > { %v1946_v60 = vpop.f32.mrf.mxu0 }
 0x621   : > { %v2814_v58 = vpack.i.bf16 %v1946_v60, %v1943_v57  ;;  %v2523_v57 = vld [vmem:[%s617_s16] ss:$0 sm:$0xff] }
 0x622   : > { %v2711_v21 = vpop.f32.mrf.mxu0 }
 0x623   : > { %2815 = vrot.lane.b32.xlu1 %v2814_v58, %s2955_s13 }
 0x67a   : > { %v2791_v50 = vpop.permute.xlu1 %2790 }
 0x67b   : > { %v2793_v16 = vunpack.i.h.bf16 %v2791_v50  ;;  %v2792_v10 = vunpack.i.l.bf16 %v2791_v50 }
 0x67d   : > { %v2001_v18 = vsel %vm893_vm4, %v3493_v30, %v2793_v16  ;;  %v2823_v30 = vld [vmem:[%s3092_s26 + $0x18] sm:$0xff]  }
 0x67e   : > { %v2796_v2 = vpop.permute.xlu0 %2795  ;;  %2720 = vmatprep.subr.bf16.mxu0 %v2823_v30 }
 0x67f   : > { %v2798_v55 = vunpack.i.h.bf16 %v2796_v2  ;;  %v2797_v61 = vunpack.i.l.bf16 %v2796_v2  ;;  %2721 = vmatpush3.bf16.msra.mxu0 %v2823_v30 }
 0x680   : > { %2722 = vmatprep.subr.bf16.mxu0 %v2824_v33 }
 0x681   : > { %v1999_v44 = vsel %vm893_vm4, %v1617_v23, %v2798_v55  ;;  %v1998_v63 = vsel %vm893_vm4, %v3489_v19, %v2797_v61  ;;  %v2000_v19 = vsel %vm893_vm4, %v3491_v24, %v2792_v10  ;;  %v2825_v24 = vld [vmem:[%s3092_s26 + $0x8] sm:$0xff]  }
 0x683   : > { %2723 = vmatpush3.bf16.msra.mxu0 %v2824_v33 }
 0x684   : > { %2724 = vmatprep.subr.bf16.mxu0 %v2825_v24 }
 0x686   : > { %v2806_v26 = vpop.permute.xlu0 %2805 }
 0x687   : > { %v2808_v59 = vunpack.i.h.bf16 %v2806_v26  ;;  %v2807_v34 = vunpack.i.l.bf16 %v2806_v26  ;;  %2725 = vmatpush3.bf16.msra.mxu0 %v2825_v24 }
 0x688   : > { %2726 = vmatprep.subr.bf16.mxu0 %v2826_v22 }
 0x689   : > { %v2003_v3 = vsel %vm1291_vm5, %v1999_v44, %v2808_v59  ;;  %v2002_v37 = vsel %vm1291_vm5, %v1998_v63, %v2807_v34  ;;  %v2801_v5 = vpop.permute.xlu1 %2800 }
 0x68a   : > { %v2803_v7 = vunpack.i.h.bf16 %v2801_v5  ;;  %v2802_v52 = vunpack.i.l.bf16 %v2801_v5 }
 0x68b   : > { %2727 = vmatpush3.bf16.msra.mxu0 %v2826_v22 }
 0x68c   : > { %v2005_v47 = vsel %vm1291_vm5, %v2001_v18, %v2803_v7  ;;  %v2004_v27 = vsel %vm1291_vm5, %v2000_v19, %v2802_v52 }
 0x68e   : > { %v2811_v62 = vpop.permute.xlu0 %2810 }
 0x68f   : > { %v2813_v29 = vunpack.i.h.bf16 %v2811_v62  ;;  %v2812_v1 = vunpack.i.l.bf16 %v2811_v62 }
 0x691   : > { %v2008_v53 = vsel %vm2006_vm6, %v2003_v3, %v2813_v29  ;;  %v2007_v45 = vsel %vm2006_vm6, %v2002_v37, %v2812_v1 }
 0x692   : > { %v2011_v6 = vpack.c.bf16 %v2008_v53, %v2007_v45 }
 0x694   : > { %2716 = vmatprep.mubr.msk.bf16.mxu1 %vm760_vm2, %v2011_v6 }
 0x695   : > { %v2816_v56 = vpop.permute.xlu1 %2815 }
 0x696   : > { %v2818_v25 = vunpack.i.h.bf16 %v2816_v56  ;;  %v2817_v23 = vunpack.i.l.bf16 %v2816_v56 }
 0x698   : > { %v2010_v31 = vsel %vm2006_vm6, %v2005_v47, %v2818_v25  ;;  %v2009_v32 = vsel %vm2006_vm6, %v2004_v27, %v2817_v23 }
 0x699   : > { %v2012_v28 = vpack.c.bf16 %v2010_v31, %v2009_v32 }
 0x69b   : > { %2717 = vmatmul.mubr.msk.bf16.vlgmr.msra.gmra.mxu1 %vm760_vm2, %v2012_v28 }
 0x75b   : > { %v2718_v36 = vpop.f32.mrf.mxu1 }
 0x75c   : > { %v2085_v40 = vadd.f32 %v2718_v36, %v2518_v35 }
 0x75d   : > { %v2076_v4 = vpop.f32.mrf.mxu1 }
 0x75e   : > { %v2077_v9 = vadd.f32 %v2518_v35, %v2076_v4  ;;  %v2097_v38 = vmul.f32 0.10916296, %v2085_v40  ;;  %vm2093_vm8 = vcmp.ge.f32.partialorder %v2085_v40, 0.0 }
 0x75f   : > { %v2719_v49 = vpop.f32.mrf.mxu1 }
 0x760   : > { %v2095_v41 = vmul.f32 0.10916296, %v2077_v9  ;;  %v2088_v48 = vadd.f32 %v2719_v49, %v2518_v35  ;;  %vm2091_vm7 = vcmp.ge.f32.partialorder %v2077_v9, 0.0  ;;  %v2101_v8 = vsel %vm2093_vm8, %v2085_v40, %v2097_v38 }
 0x761   : > { %v2079_v43 = vpop.f32.mrf.mxu1  ;;  %v2105_v15 = vmul.f32 1.4058619, %v2101_v8 }
 0x762   : > { %vm2094_vm9 = vcmp.ge.f32.partialorder %v2088_v48, 0.0  ;;  %v2098_v46 = vmul.f32 0.10916296, %v2088_v48  ;;  %v2080_v51 = vadd.f32 %v2518_v35, %v2079_v43  ;;  %v2099_v39 = vsel %vm2091_vm7, %v2077_v9, %v2095_v41 }
 0x763   : > { %v2103_v12 = vmul.f32 1.4058619, %v2099_v39 }
 0x764   : > { %v2102_v14 = vsel %vm2094_vm9, %v2088_v48, %v2098_v46  ;;  %vm2092_vm10 = vcmp.ge.f32.partialorder %v2080_v51, 0.0  ;;  %v2096_v11 = vmul.f32 0.10916296, %v2080_v51 }
 0x765   : > { %v2106_v54 = vmul.f32 1.4058619, %v2102_v14 }
 0x766   : > { %v2100_v42 = vsel %vm2092_vm10, %v2080_v51, %v2096_v11 }
 0x767   : > { %v2104_v13 = vmul.f32 1.4058619, %v2100_v42  ;;  %v2108_v17 = vpack.c.bf16 %v2106_v54, %v2105_v15 }
 0x769   : > { %v2107_v0 = vpack.c.bf16 %v2104_v13, %v2103_v12 }
 0x76b   : > { %2728 = vmatprep.mubr.msk.bf16.mxu0 %vm2148_vm11, %v2107_v0 }
 0x76c   : > { %2729 = vmatmul.mubr.msk.bf16.vlgmr.msra.gmra.mxu0 %vm2148_vm11, %v2108_v17 }
 0x82c   : > { %v2730_v20 = vpop.f32.mrf.mxu0 }
 0x82d   : > { %v2198_v60 = vadd.f32 %v2730_v20, %v2523_v57 }
 0x82e   : > { %v2189_v58 = vpop.f32.mrf.mxu0 }
 0x82f   : > { %vm2206_vm12 = vcmp.ge.f32.partialorder %v2198_v60, 0.0  ;;  %v2210_v21 = vmul.f32 0.10916296, %v2198_v60  ;;  %v2190_v2 = vadd.f32 %v2523_v57, %v2189_v58 }
 0x830   : > { %v2731_v26 = vpop.f32.mrf.mxu0 }
 0x831   : > { %v2214_v55 = vsel %vm2206_vm12, %v2198_v60, %v2210_v21  ;;  %vm2204_vm13 = vcmp.ge.f32.partialorder %v2190_v2, 0.0  ;;  %v2208_v61 = vmul.f32 0.10916296, %v2190_v2  ;;  %v2201_v50 = vadd.f32 %v2731_v26, %v2523_v57 }
 0x832   : > { %v2218_v59 = vmul.f32 1.4058619, %v2214_v55  ;;  %v2192_v34 = vpop.f32.mrf.mxu0 }
 0x833   : > { %v2212_v62 = vsel %vm2204_vm13, %v2190_v2, %v2208_v61  ;;  %vm2207_vm14 = vcmp.ge.f32.partialorder %v2201_v50, 0.0  ;;  %v2211_v44 = vmul.f32 0.10916296, %v2201_v50  ;;  %v2193_v63 = vadd.f32 %v2523_v57, %v2192_v34 }
 0x834   : > { %2222 = vst.msk [vmem:[#allocation2 + $0x10] sm:$0xff] %vm760_vm2, %v2218_v59  ;;  %v2216_v29 = vmul.f32 1.4058619, %v2212_v62 }
 0x835   : > { %v2215_v1 = vsel %vm2207_vm14, %v2201_v50, %v2211_v44  ;;  %vm2205_vm15 = vcmp.ge.f32.partialorder %v2193_v63, 0.0  ;;  %v2209_v3 = vmul.f32 0.10916296, %v2193_v63 }
 0x836   : > { %2220 = vst.msk [vmem:[#allocation2] sm:$0xff] %vm760_vm2, %v2216_v29  ;;  %v2219_v37 = vmul.f32 1.4058619, %v2215_v1  ;;  %2227 = sbr.rel (%p2530_p6) target bundleno = 2331 (0x91b), region = 84 }
 0x837   : > { %v2213_v5 = vsel %vm2205_vm15, %v2193_v63, %v2209_v3 }
 0x838   : > { %2223 = vst.msk [vmem:[#allocation2 + $0x18] sm:$0xff] %vm760_vm2, %v2219_v37  ;;  %v2217_v53 = vmul.f32 1.4058619, %v2213_v5 }
 0x83a   : > { %2221 = vst.msk [vmem:[#allocation2 + $0x8] sm:$0xff] %vm760_vm2, %v2217_v53 }
 0x83b   : > { %v2891_v45 = vld [vmem:[%s3585_s12 + $0x8] sm:$0xff]   ;;  %v2956_v16 = vmov 0.0   ;;  %v2892_v10 = vld [vmem:[%s3585_s12] sm:$0xff]   ;;  %vm2957_vm0 = vmmov 0   ;;  %v2228_v6 = vsel %vm760_vm2, %v2216_v29, 0.0  ;;  %v2229_v7 = vsel %vm760_vm2, %v2217_v53, 0.0 }
 0x83c   : > { %2732 = vmatprep.subr.bf16.mxu0 %v2956_v16  ;;  %2736 = vmatprep.mubr.msk.bf16.mxu0 %vm2957_vm0, %v2956_v16  ;;  %v2237_v52 = vsel %vm760_vm2, %v2218_v59, 0.0  ;;  %v2238_v56 = vsel %vm760_vm2, %v2219_v37, 0.0  ;;  %v2230_v18 = vadd.f32 %v2229_v7, %v2228_v6  ;;  %vm2266_vm1 = vcmask 1041409   ;;  %v2531_v43 = vld [vmem:[%s3600_s27] ss:$0 sm:$0xff] }
 0x83d   : > { %2733 = vmatpush3.bf16.msra.mxu0 %v2891_v45  ;;  %v2239_v19 = vadd.f32 %v2238_v56, %v2237_v52  ;;  %vm2324_vm3 = vcmask 74752  }
 0x83e   : > { %2734 = vmatprep.subr.bf16.mxu0 %v2956_v16  ;;  %v2231_v25 = vrot.slane %v2230_v18, 4 }
 0x83f   : > { %v2240_v23 = vrot.slane %v2239_v19, 4 }
 0x840   : > { %v2232_v47 = vadd.f32 %v2231_v25, %v2230_v18 }
 0x841   : > { %2735 = vmatpush3.bf16.msra.mxu0 %v2892_v10  ;;  %v2241_v27 = vadd.f32 %v2240_v23, %v2239_v19 }
 0x842   : > { %v2233_v31 = vrot.slane %v2232_v47, 2 }
 0x843   : > { %v2242_v32 = vrot.slane %v2241_v27, 2 }
 0x844   : > { %v2234_v28 = vadd.f32 %v2233_v31, %v2232_v47 }
 0x845   : > { %v2243_v30 = vadd.f32 %v2242_v32, %v2241_v27 }
 0x846   : > { %v2235_v33 = vrot.slane %v2234_v28, 1 }
 0x847   : > { %v2244_v24 = vrot.slane %v2243_v30, 1 }
 0x848   : > { %v2236_v22 = vadd.f32 %v2235_v33, %v2234_v28 }
 0x849   : > { %v2245_v35 = vadd.f32 %v2244_v24, %v2243_v30 }
 0x84a   : > { %v2247_v36 = vmul.f32 0.0625, %v2236_v22 }
 0x84b   : > { %v2248_v40 = vmul.f32 0.0625, %v2245_v35 }
 0x84c   : > { %v2249_v4 = vpack.c.bf16 %v2247_v36, %v2247_v36 }
 0x84d   : > { %v2250_v9 = vpack.c.bf16 %v2248_v40, %v2248_v40 }
 0x84e   : > { %v2264_v49 = vunpack.c.l.b16 %v2249_v4 }
 0x84f   : > { %v2265_v41 = vunpack.c.l.b16 %v2250_v9 }
 0x851   : > { %v2267_v48 = vsel %vm2266_vm1, %v2265_v41, %v2264_v49 }
 0x852   : > { %v2268_v38 = vpack.c.b16 %v2267_v48, %v2267_v48 }
 0x854   : > { %2737 = vmatmul.mubr.msk.bf16.vlgmr.msra.gmra.mxu0 %vm760_vm2, %v2268_v38 }
 0x914   : > { %v2318_v46 = vpop.f32.mrf.mxu0 }
 0x915   : > { %v2319_v51 = vadd.f32 %v2531_v43, %v2318_v46 }
 0x916   : > { %v2738_v39 = vpop.f32.mrf.mxu0 }
 0x917   : > { %2325 = vst.msk [vmem:[#allocation3] sm:$0x3] %vm2324_vm3, %v2319_v51 }
 0x918   : > { %v2321_v14 = vpop.f32.mrf.mxu0 }
 0x91a   : > { %v2739_v11 = vpop.f32.mrf.mxu0 }
 0x91b PF: > { %s3601_s14 = sld [smem:[#allocation7_spill]]  ;;  %s2958_s17 = smov [#allocation3]  }
 0x91c   : > { %s2335_s19 = sshll.u32 %s2958_s17, 4  ;;  %s2336_s19 = int_to_ptr.vmem [resolvable:$true] %s2335_s19 }
 0x91d   : > { %s2893_s30 = scalar_lea.vmem %s2336_s19, 32  ;;  %p2900_p11 = scmp.lt.s32.totalorder %s2336_s19, %s2336_s19 }
 0x91e   : > { %p2894_p8 = scmp.ne.s32.totalorder %s2336_s19, %s2893_s30  ;;  %p2901_p12 = scmp.lt.s32.totalorder %s2893_s30, %s2893_s30 }
 0x920   : > { %p2902_p13 = por %p2901_p12, %p2900_p11 }
 0x921   : > { %s3602_s25 = sadd.s32 4294967295, %s3601_s14  }
 0x922   : > { %p3549_p7 = scmp.eq.s32.totalorder %s3602_s25, 1 }
 0x924   : > { %p2895_p9 = pnand %p2894_p8, %p3549_p7 }
 0x926   : > { %p2896_p10 = pneg %p2895_p9 }
 0x928   : > { %p2903_p0 = pnand %p2902_p13, %p2896_p10 }
 0x92a   : > { %2906 = shalt.err (!%p2903_p0)
}
 0x92b   : > { %s3604_s13 = sld [smem:[#allocation12_spill]] }
 0x931   : > { %2741 = dma.vmem_to_hbm [thread:$0]  (%p3549_p7), %s2336_s19, 32, %s3604_s13, [#allocation4]  }
 0x932   : > { %2930 = dma.done.wait (%p3549_p7), [#allocation4], 32  }
 0x933   : > { %2932 = vsyncadd (%p3549_p7), [#allocation4], 4294967264 }
 0x934 PF: > { %s3605_s20 = sld [smem:[#allocation7_spill]] }
 0x935   : > { %s3606_s29 = sld [smem:[#allocation6_spill]] }
 0x936   : > { %s3607_s30 = sld [smem:[#allocation8_spill]] }
 0x93a   : > { %s25_s15 = sadd.s32 1, %s3605_s20  }
 0x93b   : > { %p22_p1 = scmp.ge.s32.totalorder %s25_s15, 4  }
 0x93d   :  { %24 = sbr.rel (!%p22_p1) target bundleno = 7 (0x7), region = 136 }
 0x942   :  { %2348 = vsyncpa [#allocation4], 1 }
 0x943   :  { %2350 = vsyncpa [#allocation4 + $0x1], 1 }

</bundles_post_ra>
